<compile_context>
chip_gen: v7x
topology: tpu7x:2x2x1
jax: 0.10.0
libtpu: 0.0.40
codegen_flags: <defaults>
</compile_context>

<pallas_src>
import math
import functools

import jax
import jax.numpy as jnp
from jax.experimental import pallas as pl
from jax.experimental.pallas import tpu as pltpu


# ---------------------------------------------------------------------------
# In-kernel helpers
# ---------------------------------------------------------------------------
def _erf(z):
    # Abramowitz & Stegun 7.1.26 rational approximation (max abs err ~1.5e-7),
    # built only from ops guaranteed to lower in Mosaic (exp, mul, add, where).
    a1, a2, a3, a4, a5 = 0.254829592, -0.284496736, 1.421413741, -1.453152027, 1.061405429
    p = 0.3275911
    za = jnp.abs(z)
    t = 1.0 / (1.0 + p * za)
    poly = ((((a5 * t + a4) * t + a3) * t + a2) * t + a1) * t
    y = 1.0 - poly * jnp.exp(-za * za)
    return jnp.where(z >= 0.0, y, -y)


def _gelu_exact(v):
    # Matches torch.nn.functional.gelu (erf-based) up to the erf approximation above.
    return 0.5 * v * (1.0 + _erf(v * 0.7071067811865476))


def _layernorm(v, gamma, beta, eps):
    mu = jnp.mean(v, axis=-1, keepdims=True)
    var = jnp.mean((v - mu) ** 2, axis=-1, keepdims=True)
    return (v - mu) * jax.lax.rsqrt(var + eps) * gamma + beta


# ---------------------------------------------------------------------------
# Pallas kernel: one full EncoderLayer for one batch element per grid step.
# ---------------------------------------------------------------------------
def encoder_layer_kernel(x_ref, mbias_ref, pbias_ref,
                         wqkv_ref, bqkv_ref, wo_ref, bo_ref,
                         g1_ref, be1_ref, w1_ref, b1_ref, w2_ref, b2_ref,
                         g2_ref, be2_ref,
                         y_ref, attn_ref,
                         *, n_head, d_head, eps, compute_dtype):
    x = x_ref[0]                      # (S, D) f32
    H, Dh = n_head, d_head
    cdt = compute_dtype

    # ---- fused QKV projection: one [S,D] @ [D, 3*H*Dh] MXU matmul ----
    # (1/sqrt(d_head) is already folded into the Q columns host-side)
    qkv = jnp.dot(x.astype(cdt), wqkv_ref[...],
                  preferred_element_type=jnp.float32) + bqkv_ref[...]   # (S, 3*H*Dh) f32

    # Additive attention-mask bias (0 / -1e9), hoisted out of the head loop.
    mask_bias = mbias_ref[0]          # (S, S) f32

    probs = []
    ctxs = []
    for h in range(H):                # static unroll; all big matmuls already fused
        q = qkv[:, h * Dh:(h + 1) * Dh].astype(cdt)
        k = qkv[:, (H + h) * Dh:(H + h + 1) * Dh].astype(cdt)
        v = qkv[:, (2 * H + h) * Dh:(2 * H + h + 1) * Dh].astype(cdt)
        # contract on the last dim of both operands -> no materialized k.T
        s = jax.lax.dot_general(q, k,
                                dimension_numbers=(((1,), (1,)), ((), ())),
                                preferred_element_type=jnp.float32)     # (S, S)
        s = s + pbias_ref[h] + mask_bias
        s = s - jnp.max(s, axis=-1, keepdims=True)
        e = jnp.exp(s)
        inv = pl.reciprocal(jnp.sum(e, axis=-1, keepdims=True), approx=True)  # EUP, not VALU
        prob = e * inv                # softmax(dim=-1)
        probs.append(prob)
        ctxs.append(jnp.dot(prob.astype(cdt), v,
                            preferred_element_type=jnp.float32))        # (S, Dh)

    # single writeback of all head probabilities (instead of H masked stores)
    attn_ref[0] = jnp.stack(probs, axis=0)                              # (H, S, S)

    # ---- fused output projection: [S, H*Dh] @ [H*Dh, D] ----
    ctx = jnp.concatenate(ctxs, axis=-1)                                # (S, H*Dh)
    att = jnp.dot(ctx.astype(cdt), wo_ref[...],
                  preferred_element_type=jnp.float32) + bo_ref[...]
    # dropout(p) is identity in eval mode / p=0

    xa = _layernorm(x + att, g1_ref[...], be1_ref[...], eps)

    # ---- position-wise FFN (Conv1d k=1 == matmul) ----
    h1 = _gelu_exact(jnp.dot(xa.astype(cdt), w1_ref[...],
                             preferred_element_type=jnp.float32) + b1_ref[...])
    h2 = jnp.dot(h1.astype(cdt), w2_ref[...],
                 preferred_element_type=jnp.float32) + b2_ref[...]

    y_ref[0] = _layernorm(h2 + xa, g2_ref[...], be2_ref[...], eps)


# ---------------------------------------------------------------------------
# Host-side glue
# ---------------------------------------------------------------------------
def _fixed_spec(shape):
    n = len(shape)
    return pl.BlockSpec(shape, lambda b, _n=n: (0,) * _n)


def encoder_layer(x, mask_bias, pos_bias, p, *, n_head, d_head, eps,
                  compute_dtype=jnp.bfloat16):
    B, S, D = x.shape
    H, Dh = n_head, d_head
    Dff = p["w1"].shape[1]
    scale = 1.0 / math.sqrt(d_head)

    # Host-side fusion: [wq*scale | wk | wv] -> one [D, 3*H*Dh] weight (bf16 for MXU),
    # biases stay f32 and are added after f32 accumulation.
    w_qkv = jnp.concatenate([p["wq"] * scale, p["wk"], p["wv"]], axis=1).astype(compute_dtype)
    b_qkv = jnp.concatenate([p["bq"] * scale, p["bk"], p["bv"]], axis=0).reshape(1, 3 * H * Dh)
    w_o = p["wo"].astype(compute_dtype)
    w_1 = p["w1"].astype(compute_dtype)
    w_2 = p["w2"].astype(compute_dtype)

    kernel = functools.partial(encoder_layer_kernel, n_head=H, d_head=Dh, eps=eps,
                               compute_dtype=compute_dtype)

    in_specs = [
        pl.BlockSpec((1, S, D), lambda b: (b, 0, 0)),        # x
        pl.BlockSpec((1, S, S), lambda b: (b, 0, 0)),        # additive mask bias
        _fixed_spec((H, S, S)),                              # relative-position bias
        _fixed_spec((D, 3 * H * Dh)), _fixed_spec((1, 3 * H * Dh)),   # fused QKV
        _fixed_spec((H * Dh, D)), _fixed_spec((1, D)),       # fused output proj
        _fixed_spec((1, D)), _fixed_spec((1, D)),            # ln1 gamma, beta
        _fixed_spec((D, Dff)), _fixed_spec((1, Dff)),        # conv1 (as matmul)
        _fixed_spec((Dff, D)), _fixed_spec((1, D)),          # conv2 (as matmul)
        _fixed_spec((1, D)), _fixed_spec((1, D)),            # ln2 gamma, beta
    ]
    out_specs = (
        pl.BlockSpec((1, S, D), lambda b: (b, 0, 0)),
        pl.BlockSpec((1, H, S, S), lambda b: (b, 0, 0, 0)),
    )
    out_shapes = (
        jax.ShapeDtypeStruct((B, S, D), jnp.float32),
        jax.ShapeDtypeStruct((B, H, S, S), jnp.float32),
    )
    # NOTE: for scaled-up configs (large S / D / Dff) add a query-tile grid axis and
    # single-buffer the constant-index weight BlockSpecs (pl.Buffered(1)) so the
    # footprint fits v7x's 64 MiB VMEM; unnecessary at these toy shapes.
    return pl.pallas_call(
        kernel,
        out_shape=out_shapes,
        grid=(B,),
        in_specs=in_specs,
        out_specs=out_specs,
        compiler_params=pltpu.CompilerParams(
            dimension_semantics=("parallel",),
            vmem_limit_bytes=32 * 1024 * 1024),
    )(x, mask_bias, pos_bias,
      w_qkv, b_qkv, w_o, p["bo"].reshape(1, D),
      p["ln1_g"].reshape(1, D), p["ln1_b"].reshape(1, D),
      w_1, p["b1"].reshape(1, Dff), w_2, p["b2"].reshape(1, D),
      p["ln2_g"].reshape(1, D), p["ln2_b"].reshape(1, D))


def relative_position_bucket(relative_position, bidirectional, num_buckets=32, max_distance=128):
    ret = jnp.zeros_like(relative_position)
    n = -relative_position
    if bidirectional:
        num_buckets //= 2
        ret = ret + (n < 0).astype(jnp.int32) * num_buckets
        n = jnp.abs(n)
    else:
        n = jnp.maximum(n, 0)
    max_exact = num_buckets // 2
    is_small = n < max_exact
    n_safe = jnp.maximum(n, 1)  # avoid log(0); those entries are never selected
    val_if_large = max_exact + (
        jnp.log(n_safe.astype(jnp.float32) / max_exact)
        / math.log(max_distance / max_exact)
        * (num_buckets - max_exact)
    ).astype(jnp.int32)
    val_if_large = jnp.minimum(val_if_large, num_buckets - 1)
    return ret + jnp.where(is_small, n, val_if_large)


def compute_position_bias(qlen, klen, rel_emb, bidirectional=False):
    ctx = jnp.arange(qlen, dtype=jnp.int32)[:, None]
    mem = jnp.arange(klen, dtype=jnp.int32)[None, :]
    rp = mem - ctx
    bucket = relative_position_bucket(rp, bidirectional)
    values = rel_emb[bucket]                       # (qlen, klen, n_head)
    return jnp.transpose(values, (2, 0, 1))        # (n_head, qlen, klen)


def encoder_forward(enc_embd, enc_self_mask, layer_params, *, n_head, d_head, eps,
                    compute_dtype=jnp.bfloat16):
    """Encoder.forward: stacks EncoderLayer Pallas kernels."""
    B, S, D = enc_embd.shape
    # masked_fill(-1e9) is realized as an additive bias (0 / -1e9), hoisted to the host
    # so the kernel's head loop carries no compare/select work.
    mask_bias = enc_self_mask.astype(jnp.float32) * jnp.float32(-1000000000.0)
    out = enc_embd
    attn_probs = []
    for p in layer_params:
        # EncoderLayer -> MultiHeadAttention default bidirectional=False
        pos_bias = compute_position_bias(S, S, p["rel_emb"], bidirectional=False)
        out, prob = encoder_layer(out, mask_bias, pos_bias, p,
                                  n_head=n_head, d_head=d_head, eps=eps,
                                  compute_dtype=compute_dtype)
        attn_probs.append(prob)
    return out, attn_probs


def init_layer_params(key, D, H, Dh, Dff, num_buckets=32):
    ks = jax.random.split(key, 12)
    s = 0.02
    return {
        "wq": jax.random.normal(ks[0], (D, H * Dh), jnp.float32) * s,
        "bq": jax.random.normal(ks[1], (H * Dh,), jnp.float32) * s,
        "wk": jax.random.normal(ks[2], (D, H * Dh), jnp.float32) * s,
        "bk": jax.random.normal(ks[3], (H * Dh,), jnp.float32) * s,
        "wv": jax.random.normal(ks[4], (D, H * Dh), jnp.float32) * s,
        "bv": jax.random.normal(ks[5], (H * Dh,), jnp.float32) * s,
        "wo": jax.random.normal(ks[6], (H * Dh, D), jnp.float32) * s,
        "bo": jax.random.normal(ks[7], (D,), jnp.float32) * s,
        "ln1_g": jnp.ones((D,), jnp.float32),
        "ln1_b": jnp.zeros((D,), jnp.float32),
        "w1": jax.random.normal(ks[8], (D, Dff), jnp.float32) * s,
        "b1": jax.random.normal(ks[9], (Dff,), jnp.float32) * s,
        "w2": jax.random.normal(ks[10], (Dff, D), jnp.float32) * s,
        "b2": jnp.zeros((D,), jnp.float32),
        "ln2_g": jnp.ones((D,), jnp.float32),
        "ln2_b": jnp.zeros((D,), jnp.float32),
        "rel_emb": jax.random.normal(ks[11], (num_buckets, H), jnp.float32) * s,
    }


if __name__ == "__main__":
    # Small config consistent with the module: d_hidn=32, n_head=4, d_head=8,
    # d_ff=64, n_layer=2, dropout=0.0 (eval), layer_norm_epsilon=1e-6.
    B, S, D, H, Dh, Dff, L = 2, 8, 32, 4, 8, 64, 2
    eps = 1e-6

    key = jax.random.PRNGKey(0)
    k_x, k_layers = jax.random.split(key)
    enc_embd = jax.random.normal(k_x, (B, S, D), jnp.float32)

    # Padding-style self-attention mask: True = masked (key position is padding).
    lens = jnp.array([S, S - 2], dtype=jnp.int32)
    pad = jnp.arange(S, dtype=jnp.int32)[None, :] >= lens[:, None]     # (B, S)
    enc_self_mask = jnp.broadcast_to(pad[:, None, :], (B, S, S))       # (B, S, S)

    layer_keys = jax.random.split(k_layers, L)
    layer_params = [init_layer_params(layer_keys[i], D, H, Dh, Dff) for i in range(L)]

    enc_out, attn_probs = encoder_forward(enc_embd, enc_self_mask, layer_params,
                                          n_head=H, d_head=Dh, eps=eps)
    jax.block_until_ready(enc_out)
    for p in attn_probs:
        jax.block_until_ready(p)

    assert enc_out.shape == (B, S, D)
    assert len(attn_probs) == L and attn_probs[0].shape == (B, H, S, S)
    # TODO(synk): dropout layers (attn-prob, attn-out, FFN) are identity (eval mode / p=0).
    print("KERNEL_OK")
</pallas_src>

<mosaic_0001>
module attributes {stable_mosaic.version = 11 : i64} {
  func.func @encoder_layer_kernel(%arg0: i32, %arg1: memref<1x8x32xf32, #tpu.memory_space<vmem>>, %arg2: memref<1x8x8xf32, #tpu.memory_space<vmem>>, %arg3: memref<4x8x8xf32, #tpu.memory_space<vmem>>, %arg4: memref<32x96xbf16, #tpu.memory_space<vmem>>, %arg5: memref<1x96xf32, #tpu.memory_space<vmem>>, %arg6: memref<32x32xbf16, #tpu.memory_space<vmem>>, %arg7: memref<1x32xf32, #tpu.memory_space<vmem>>, %arg8: memref<1x32xf32, #tpu.memory_space<vmem>>, %arg9: memref<1x32xf32, #tpu.memory_space<vmem>>, %arg10: memref<32x64xbf16, #tpu.memory_space<vmem>>, %arg11: memref<1x64xf32, #tpu.memory_space<vmem>>, %arg12: memref<64x32xbf16, #tpu.memory_space<vmem>>, %arg13: memref<1x32xf32, #tpu.memory_space<vmem>>, %arg14: memref<1x32xf32, #tpu.memory_space<vmem>>, %arg15: memref<1x32xf32, #tpu.memory_space<vmem>>, %arg16: memref<1x8x32xf32, #tpu.memory_space<vmem>>, %arg17: memref<1x4x8x8xf32, #tpu.memory_space<vmem>>) attributes {dimension_semantics = [#tpu.dimension_semantics<parallel>], iteration_bounds = array<i64: 2>, scalar_prefetch = 0 : i64, scratch_operands = 0 : i64, tpu.core_type = #tpu.core_type<tc>, window_params = [{transform_indices = @transform_0, window_bounds = array<i64: 1, 8, 32>}, {transform_indices = @transform_1, window_bounds = array<i64: 1, 8, 8>}, {pipeline_mode = #tpu.pipeline_mode<synchronous>, transform_indices = @transform_2, window_bounds = array<i64: 4, 8, 8>}, {pipeline_mode = #tpu.pipeline_mode<synchronous>, transform_indices = @transform_3, window_bounds = array<i64: 32, 96>}, {pipeline_mode = #tpu.pipeline_mode<synchronous>, transform_indices = @transform_4, window_bounds = array<i64: 1, 96>}, {pipeline_mode = #tpu.pipeline_mode<synchronous>, transform_indices = @transform_5, window_bounds = array<i64: 32, 32>}, {pipeline_mode = #tpu.pipeline_mode<synchronous>, transform_indices = @transform_6, window_bounds = array<i64: 1, 32>}, {pipeline_mode = #tpu.pipeline_mode<synchronous>, transform_indices = @transform_7, window_bounds = array<i64: 1, 32>}, {pipeline_mode = #tpu.pipeline_mode<synchronous>, transform_indices = @transform_8, window_bounds = array<i64: 1, 32>}, {pipeline_mode = #tpu.pipeline_mode<synchronous>, transform_indices = @transform_9, window_bounds = array<i64: 32, 64>}, {pipeline_mode = #tpu.pipeline_mode<synchronous>, transform_indices = @transform_10, window_bounds = array<i64: 1, 64>}, {pipeline_mode = #tpu.pipeline_mode<synchronous>, transform_indices = @transform_11, window_bounds = array<i64: 64, 32>}, {pipeline_mode = #tpu.pipeline_mode<synchronous>, transform_indices = @transform_12, window_bounds = array<i64: 1, 32>}, {pipeline_mode = #tpu.pipeline_mode<synchronous>, transform_indices = @transform_13, window_bounds = array<i64: 1, 32>}, {pipeline_mode = #tpu.pipeline_mode<synchronous>, transform_indices = @transform_14, window_bounds = array<i64: 1, 32>}, {transform_indices = @transform_15, window_bounds = array<i64: 1, 8, 32>}, {transform_indices = @transform_16, window_bounds = array<i64: 1, 4, 8, 8>}]} {
    %c0 = arith.constant 0 : index
    %c0_0 = arith.constant 0 : index
    %c0_1 = arith.constant 0 : index
    %0 = vector.load %arg1[%c0, %c0_0, %c0_1] : memref<1x8x32xf32, #tpu.memory_space<vmem>>, vector<1x8x32xf32>
    %1 = vector.shape_cast %0 : vector<1x8x32xf32> to vector<8x32xf32>
    %2 = arith.truncf %1 : vector<8x32xf32> to vector<8x32xbf16>
    %c0_2 = arith.constant 0 : index
    %c0_3 = arith.constant 0 : index
    %3 = vector.load %arg4[%c0_2, %c0_3] : memref<32x96xbf16, #tpu.memory_space<vmem>>, vector<32x96xbf16>
    %cst = arith.constant dense<0.000000e+00> : vector<8x96xf32>
    %4 = tpu.matmul %2, %3, %cst {dimension_numbers = #tpu.dot_dimension_numbers<[1], [0], [0], [1], [0, 0, 1, 1], [], []>} : vector<8x32xbf16>, vector<32x96xbf16>, vector<8x96xf32> -> vector<8x96xf32>
    %c0_4 = arith.constant 0 : index
    %c0_5 = arith.constant 0 : index
    %5 = vector.load %arg5[%c0_4, %c0_5] : memref<1x96xf32, #tpu.memory_space<vmem>>, vector<1x96xf32>
    %6 = vector.broadcast %5 : vector<1x96xf32> to vector<8x96xf32>
    %7 = arith.addf %4, %6 : vector<8x96xf32>
    %c0_6 = arith.constant 0 : index
    %c0_7 = arith.constant 0 : index
    %c0_8 = arith.constant 0 : index
    %8 = vector.load %arg2[%c0_6, %c0_7, %c0_8] : memref<1x8x8xf32, #tpu.memory_space<vmem>>, vector<1x8x8xf32>
    %9 = vector.shape_cast %8 : vector<1x8x8xf32> to vector<8x8xf32>
    %10 = vector.extract_strided_slice %7 {offsets = [0, 0], sizes = [8, 8], strides = [1, 1]} : vector<8x96xf32> to vector<8x8xf32>
    %11 = arith.truncf %10 : vector<8x8xf32> to vector<8x8xbf16>
    %12 = vector.extract_strided_slice %7 {offsets = [0, 32], sizes = [8, 8], strides = [1, 1]} : vector<8x96xf32> to vector<8x8xf32>
    %13 = arith.truncf %12 : vector<8x8xf32> to vector<8x8xbf16>
    %14 = vector.extract_strided_slice %7 {offsets = [0, 64], sizes = [8, 8], strides = [1, 1]} : vector<8x96xf32> to vector<8x8xf32>
    %15 = arith.truncf %14 : vector<8x8xf32> to vector<8x8xbf16>
    %cst_9 = arith.constant dense<0.000000e+00> : vector<8x8xf32>
    %16 = tpu.matmul %11, %13, %cst_9 {dimension_numbers = #tpu.dot_dimension_numbers<[1], [1], [0], [0], [0, 0, 1, 0], [], []>} : vector<8x8xbf16>, vector<8x8xbf16>, vector<8x8xf32> -> vector<8x8xf32>
    %c0_10 = arith.constant 0 : index
    %c0_11 = arith.constant 0 : index
    %c0_12 = arith.constant 0 : index
    %17 = vector.load %arg3[%c0_10, %c0_11, %c0_12] : memref<4x8x8xf32, #tpu.memory_space<vmem>>, vector<1x8x8xf32>
    %18 = vector.shape_cast %17 : vector<1x8x8xf32> to vector<8x8xf32>
    %19 = arith.addf %16, %18 : vector<8x8xf32>
    %20 = arith.addf %19, %9 : vector<8x8xf32>
    %cst_13 = arith.constant dense<0xFF800000> : vector<8xf32>
    %21 = vector.multi_reduction <maximumf>, %20, %cst_13 [1] : vector<8x8xf32> to vector<8xf32>
    %22 = vector.shape_cast %21 : vector<8xf32> to vector<8x1xf32>
    %23 = vector.broadcast %22 : vector<8x1xf32> to vector<8x8xf32>
    %24 = arith.subf %20, %23 : vector<8x8xf32>
    %25 = math.exp %24 : vector<8x8xf32>
    %cst_14 = arith.constant dense<0.000000e+00> : vector<8xf32>
    %26 = vector.multi_reduction <add>, %25, %cst_14 [1] : vector<8x8xf32> to vector<8xf32>
    %27 = vector.shape_cast %26 : vector<8xf32> to vector<8x1xf32>
    %28 = tpu.reciprocal %27 {approx = true} : vector<8x1xf32> -> vector<8x1xf32>
    %29 = vector.broadcast %28 : vector<8x1xf32> to vector<8x8xf32>
    %30 = arith.mulf %25, %29 : vector<8x8xf32>
    %31 = arith.truncf %30 : vector<8x8xf32> to vector<8x8xbf16>
    %cst_15 = arith.constant dense<0.000000e+00> : vector<8x8xf32>
    %32 = tpu.matmul %31, %15, %cst_15 {dimension_numbers = #tpu.dot_dimension_numbers<[1], [0], [0], [1], [0, 0, 1, 1], [], []>} : vector<8x8xbf16>, vector<8x8xbf16>, vector<8x8xf32> -> vector<8x8xf32>
    %33 = vector.extract_strided_slice %7 {offsets = [0, 8], sizes = [8, 8], strides = [1, 1]} : vector<8x96xf32> to vector<8x8xf32>
    %34 = arith.truncf %33 : vector<8x8xf32> to vector<8x8xbf16>
    %35 = vector.extract_strided_slice %7 {offsets = [0, 40], sizes = [8, 8], strides = [1, 1]} : vector<8x96xf32> to vector<8x8xf32>
    %36 = arith.truncf %35 : vector<8x8xf32> to vector<8x8xbf16>
    %37 = vector.extract_strided_slice %7 {offsets = [0, 72], sizes = [8, 8], strides = [1, 1]} : vector<8x96xf32> to vector<8x8xf32>
    %38 = arith.truncf %37 : vector<8x8xf32> to vector<8x8xbf16>
    %cst_16 = arith.constant dense<0.000000e+00> : vector<8x8xf32>
    %39 = tpu.matmul %34, %36, %cst_16 {dimension_numbers = #tpu.dot_dimension_numbers<[1], [1], [0], [0], [0, 0, 1, 0], [], []>} : vector<8x8xbf16>, vector<8x8xbf16>, vector<8x8xf32> -> vector<8x8xf32>
    %c1 = arith.constant 1 : index
    %c0_17 = arith.constant 0 : index
    %c0_18 = arith.constant 0 : index
    %40 = vector.load %arg3[%c1, %c0_17, %c0_18] : memref<4x8x8xf32, #tpu.memory_space<vmem>>, vector<1x8x8xf32>
    %41 = vector.shape_cast %40 : vector<1x8x8xf32> to vector<8x8xf32>
    %42 = arith.addf %39, %41 : vector<8x8xf32>
    %43 = arith.addf %42, %9 : vector<8x8xf32>
    %cst_19 = arith.constant dense<0xFF800000> : vector<8xf32>
    %44 = vector.multi_reduction <maximumf>, %43, %cst_19 [1] : vector<8x8xf32> to vector<8xf32>
    %45 = vector.shape_cast %44 : vector<8xf32> to vector<8x1xf32>
    %46 = vector.broadcast %45 : vector<8x1xf32> to vector<8x8xf32>
    %47 = arith.subf %43, %46 : vector<8x8xf32>
    %48 = math.exp %47 : vector<8x8xf32>
    %cst_20 = arith.constant dense<0.000000e+00> : vector<8xf32>
    %49 = vector.multi_reduction <add>, %48, %cst_20 [1] : vector<8x8xf32> to vector<8xf32>
    %50 = vector.shape_cast %49 : vector<8xf32> to vector<8x1xf32>
    %51 = tpu.reciprocal %50 {approx = true} : vector<8x1xf32> -> vector<8x1xf32>
    %52 = vector.broadcast %51 : vector<8x1xf32> to vector<8x8xf32>
    %53 = arith.mulf %48, %52 : vector<8x8xf32>
    %54 = arith.truncf %53 : vector<8x8xf32> to vector<8x8xbf16>
    %cst_21 = arith.constant dense<0.000000e+00> : vector<8x8xf32>
    %55 = tpu.matmul %54, %38, %cst_21 {dimension_numbers = #tpu.dot_dimension_numbers<[1], [0], [0], [1], [0, 0, 1, 1], [], []>} : vector<8x8xbf16>, vector<8x8xbf16>, vector<8x8xf32> -> vector<8x8xf32>
    %56 = vector.extract_strided_slice %7 {offsets = [0, 16], sizes = [8, 8], strides = [1, 1]} : vector<8x96xf32> to vector<8x8xf32>
    %57 = arith.truncf %56 : vector<8x8xf32> to vector<8x8xbf16>
    %58 = vector.extract_strided_slice %7 {offsets = [0, 48], sizes = [8, 8], strides = [1, 1]} : vector<8x96xf32> to vector<8x8xf32>
    %59 = arith.truncf %58 : vector<8x8xf32> to vector<8x8xbf16>
    %60 = vector.extract_strided_slice %7 {offsets = [0, 80], sizes = [8, 8], strides = [1, 1]} : vector<8x96xf32> to vector<8x8xf32>
    %61 = arith.truncf %60 : vector<8x8xf32> to vector<8x8xbf16>
    %cst_22 = arith.constant dense<0.000000e+00> : vector<8x8xf32>
    %62 = tpu.matmul %57, %59, %cst_22 {dimension_numbers = #tpu.dot_dimension_numbers<[1], [1], [0], [0], [0, 0, 1, 0], [], []>} : vector<8x8xbf16>, vector<8x8xbf16>, vector<8x8xf32> -> vector<8x8xf32>
    %c2 = arith.constant 2 : index
    %c0_23 = arith.constant 0 : index
    %c0_24 = arith.constant 0 : index
    %63 = vector.load %arg3[%c2, %c0_23, %c0_24] : memref<4x8x8xf32, #tpu.memory_space<vmem>>, vector<1x8x8xf32>
    %64 = vector.shape_cast %63 : vector<1x8x8xf32> to vector<8x8xf32>
    %65 = arith.addf %62, %64 : vector<8x8xf32>
    %66 = arith.addf %65, %9 : vector<8x8xf32>
    %cst_25 = arith.constant dense<0xFF800000> : vector<8xf32>
    %67 = vector.multi_reduction <maximumf>, %66, %cst_25 [1] : vector<8x8xf32> to vector<8xf32>
    %68 = vector.shape_cast %67 : vector<8xf32> to vector<8x1xf32>
    %69 = vector.broadcast %68 : vector<8x1xf32> to vector<8x8xf32>
    %70 = arith.subf %66, %69 : vector<8x8xf32>
    %71 = math.exp %70 : vector<8x8xf32>
    %cst_26 = arith.constant dense<0.000000e+00> : vector<8xf32>
    %72 = vector.multi_reduction <add>, %71, %cst_26 [1] : vector<8x8xf32> to vector<8xf32>
    %73 = vector.shape_cast %72 : vector<8xf32> to vector<8x1xf32>
    %74 = tpu.reciprocal %73 {approx = true} : vector<8x1xf32> -> vector<8x1xf32>
    %75 = vector.broadcast %74 : vector<8x1xf32> to vector<8x8xf32>
    %76 = arith.mulf %71, %75 : vector<8x8xf32>
    %77 = arith.truncf %76 : vector<8x8xf32> to vector<8x8xbf16>
    %cst_27 = arith.constant dense<0.000000e+00> : vector<8x8xf32>
    %78 = tpu.matmul %77, %61, %cst_27 {dimension_numbers = #tpu.dot_dimension_numbers<[1], [0], [0], [1], [0, 0, 1, 1], [], []>} : vector<8x8xbf16>, vector<8x8xbf16>, vector<8x8xf32> -> vector<8x8xf32>
    %79 = vector.extract_strided_slice %7 {offsets = [0, 24], sizes = [8, 8], strides = [1, 1]} : vector<8x96xf32> to vector<8x8xf32>
    %80 = arith.truncf %79 : vector<8x8xf32> to vector<8x8xbf16>
    %81 = vector.extract_strided_slice %7 {offsets = [0, 56], sizes = [8, 8], strides = [1, 1]} : vector<8x96xf32> to vector<8x8xf32>
    %82 = arith.truncf %81 : vector<8x8xf32> to vector<8x8xbf16>
    %83 = vector.extract_strided_slice %7 {offsets = [0, 88], sizes = [8, 8], strides = [1, 1]} : vector<8x96xf32> to vector<8x8xf32>
    %84 = arith.truncf %83 : vector<8x8xf32> to vector<8x8xbf16>
    %cst_28 = arith.constant dense<0.000000e+00> : vector<8x8xf32>
    %85 = tpu.matmul %80, %82, %cst_28 {dimension_numbers = #tpu.dot_dimension_numbers<[1], [1], [0], [0], [0, 0, 1, 0], [], []>} : vector<8x8xbf16>, vector<8x8xbf16>, vector<8x8xf32> -> vector<8x8xf32>
    %c3 = arith.constant 3 : index
    %c0_29 = arith.constant 0 : index
    %c0_30 = arith.constant 0 : index
    %86 = vector.load %arg3[%c3, %c0_29, %c0_30] : memref<4x8x8xf32, #tpu.memory_space<vmem>>, vector<1x8x8xf32>
    %87 = vector.shape_cast %86 : vector<1x8x8xf32> to vector<8x8xf32>
    %88 = arith.addf %85, %87 : vector<8x8xf32>
    %89 = arith.addf %88, %9 : vector<8x8xf32>
    %cst_31 = arith.constant dense<0xFF800000> : vector<8xf32>
    %90 = vector.multi_reduction <maximumf>, %89, %cst_31 [1] : vector<8x8xf32> to vector<8xf32>
    %91 = vector.shape_cast %90 : vector<8xf32> to vector<8x1xf32>
    %92 = vector.broadcast %91 : vector<8x1xf32> to vector<8x8xf32>
    %93 = arith.subf %89, %92 : vector<8x8xf32>
    %94 = math.exp %93 : vector<8x8xf32>
    %cst_32 = arith.constant dense<0.000000e+00> : vector<8xf32>
    %95 = vector.multi_reduction <add>, %94, %cst_32 [1] : vector<8x8xf32> to vector<8xf32>
    %96 = vector.shape_cast %95 : vector<8xf32> to vector<8x1xf32>
    %97 = tpu.reciprocal %96 {approx = true} : vector<8x1xf32> -> vector<8x1xf32>
    %98 = vector.broadcast %97 : vector<8x1xf32> to vector<8x8xf32>
    %99 = arith.mulf %94, %98 : vector<8x8xf32>
    %100 = arith.truncf %99 : vector<8x8xf32> to vector<8x8xbf16>
    %cst_33 = arith.constant dense<0.000000e+00> : vector<8x8xf32>
    %101 = tpu.matmul %100, %84, %cst_33 {dimension_numbers = #tpu.dot_dimension_numbers<[1], [0], [0], [1], [0, 0, 1, 1], [], []>} : vector<8x8xbf16>, vector<8x8xbf16>, vector<8x8xf32> -> vector<8x8xf32>
    %102 = vector.shape_cast %30 : vector<8x8xf32> to vector<1x8x8xf32>
    %103 = vector.shape_cast %53 : vector<8x8xf32> to vector<1x8x8xf32>
    %104 = vector.shape_cast %76 : vector<8x8xf32> to vector<1x8x8xf32>
    %105 = vector.shape_cast %99 : vector<8x8xf32> to vector<1x8x8xf32>
    %106 = tpu.concatenate %102, %103, %104, %105 in 0 : vector<1x8x8xf32>, vector<1x8x8xf32>, vector<1x8x8xf32>, vector<1x8x8xf32> -> vector<4x8x8xf32>
    %c0_34 = arith.constant 0 : index
    %c0_35 = arith.constant 0 : index
    %c0_36 = arith.constant 0 : index
    %c0_37 = arith.constant 0 : index
    %107 = vector.load %arg17[%c0_34, %c0_35, %c0_36, %c0_37] : memref<1x4x8x8xf32, #tpu.memory_space<vmem>>, vector<1x4x8x8xf32>
    %108 = vector.shape_cast %107 : vector<1x4x8x8xf32> to vector<4x8x8xf32>
    %109 = vector.shape_cast %106 : vector<4x8x8xf32> to vector<1x4x8x8xf32>
    tpu.vector_store %arg17[%c0_34, %c0_35, %c0_36, %c0_37], %109 {strides = array<i32>} : memref<1x4x8x8xf32, #tpu.memory_space<vmem>>, vector<1x4x8x8xf32>,
    %110 = tpu.concatenate %32, %55, %78, %101 in 1 : vector<8x8xf32>, vector<8x8xf32>, vector<8x8xf32>, vector<8x8xf32> -> vector<8x32xf32>
    %111 = arith.truncf %110 : vector<8x32xf32> to vector<8x32xbf16>
    %c0_38 = arith.constant 0 : index
    %c0_39 = arith.constant 0 : index
    %112 = vector.load %arg6[%c0_38, %c0_39] : memref<32x32xbf16, #tpu.memory_space<vmem>>, vector<32x32xbf16>
    %cst_40 = arith.constant dense<0.000000e+00> : vector<8x32xf32>
    %113 = tpu.matmul %111, %112, %cst_40 {dimension_numbers = #tpu.dot_dimension_numbers<[1], [0], [0], [1], [0, 0, 1, 1], [], []>} : vector<8x32xbf16>, vector<32x32xbf16>, vector<8x32xf32> -> vector<8x32xf32>
    %c0_41 = arith.constant 0 : index
    %c0_42 = arith.constant 0 : index
    %114 = vector.load %arg7[%c0_41, %c0_42] : memref<1x32xf32, #tpu.memory_space<vmem>>, vector<1x32xf32>
    %115 = vector.broadcast %114 : vector<1x32xf32> to vector<8x32xf32>
    %116 = arith.addf %113, %115 : vector<8x32xf32>
    %117 = arith.addf %1, %116 : vector<8x32xf32>
    %c0_43 = arith.constant 0 : index
    %c0_44 = arith.constant 0 : index
    %118 = vector.load %arg8[%c0_43, %c0_44] : memref<1x32xf32, #tpu.memory_space<vmem>>, vector<1x32xf32>
    %c0_45 = arith.constant 0 : index
    %c0_46 = arith.constant 0 : index
    %119 = vector.load %arg9[%c0_45, %c0_46] : memref<1x32xf32, #tpu.memory_space<vmem>>, vector<1x32xf32>
    %cst_47 = arith.constant dense<0.000000e+00> : vector<8xf32>
    %120 = vector.multi_reduction <add>, %117, %cst_47 [1] : vector<8x32xf32> to vector<8xf32>
    %121 = vector.shape_cast %120 : vector<8xf32> to vector<8x1xf32>
    %cst_48 = arith.constant 3.200000e+01 : f32
    %122 = vector.broadcast %cst_48 : f32 to vector<8x1xf32>
    %123 = arith.divf %121, %122 : vector<8x1xf32>
    %124 = vector.broadcast %123 : vector<8x1xf32> to vector<8x32xf32>
    %125 = arith.subf %117, %124 : vector<8x32xf32>
    %126 = arith.mulf %125, %125 : vector<8x32xf32>
    %cst_49 = arith.constant dense<0.000000e+00> : vector<8xf32>
    %127 = vector.multi_reduction <add>, %126, %cst_49 [1] : vector<8x32xf32> to vector<8xf32>
    %128 = vector.shape_cast %127 : vector<8xf32> to vector<8x1xf32>
    %cst_50 = arith.constant 3.200000e+01 : f32
    %129 = vector.broadcast %cst_50 : f32 to vector<8x1xf32>
    %130 = arith.divf %128, %129 : vector<8x1xf32>
    %131 = vector.broadcast %123 : vector<8x1xf32> to vector<8x32xf32>
    %132 = arith.subf %117, %131 : vector<8x32xf32>
    %cst_51 = arith.constant 9.99999997E-7 : f32
    %133 = vector.broadcast %cst_51 : f32 to vector<8x1xf32>
    %134 = arith.addf %130, %133 : vector<8x1xf32>
    %135 = math.rsqrt %134 : vector<8x1xf32>
    %136 = vector.broadcast %135 : vector<8x1xf32> to vector<8x32xf32>
    %137 = arith.mulf %132, %136 : vector<8x32xf32>
    %138 = vector.broadcast %118 : vector<1x32xf32> to vector<8x32xf32>
    %139 = arith.mulf %137, %138 : vector<8x32xf32>
    %140 = vector.broadcast %119 : vector<1x32xf32> to vector<8x32xf32>
    %141 = arith.addf %139, %140 : vector<8x32xf32>
    %142 = arith.truncf %141 : vector<8x32xf32> to vector<8x32xbf16>
    %c0_52 = arith.constant 0 : index
    %c0_53 = arith.constant 0 : index
    %143 = vector.load %arg10[%c0_52, %c0_53] : memref<32x64xbf16, #tpu.memory_space<vmem>>, vector<32x64xbf16>
    %cst_54 = arith.constant dense<0.000000e+00> : vector<8x64xf32>
    %144 = tpu.matmul %142, %143, %cst_54 {dimension_numbers = #tpu.dot_dimension_numbers<[1], [0], [0], [1], [0, 0, 1, 1], [], []>} : vector<8x32xbf16>, vector<32x64xbf16>, vector<8x64xf32> -> vector<8x64xf32>
    %c0_55 = arith.constant 0 : index
    %c0_56 = arith.constant 0 : index
    %145 = vector.load %arg11[%c0_55, %c0_56] : memref<1x64xf32, #tpu.memory_space<vmem>>, vector<1x64xf32>
    %146 = vector.broadcast %145 : vector<1x64xf32> to vector<8x64xf32>
    %147 = arith.addf %144, %146 : vector<8x64xf32>
    %cst_57 = arith.constant 5.000000e-01 : f32
    %148 = vector.broadcast %cst_57 : f32 to vector<8x64xf32>
    %149 = arith.mulf %148, %147 : vector<8x64xf32>
    %cst_58 = arith.constant 0.707106769 : f32
    %150 = vector.broadcast %cst_58 : f32 to vector<8x64xf32>
    %151 = arith.mulf %147, %150 : vector<8x64xf32>
    %152 = math.absf %151 : vector<8x64xf32>
    %cst_59 = arith.constant 0.327591091 : f32
    %153 = vector.broadcast %cst_59 : f32 to vector<8x64xf32>
    %154 = arith.mulf %153, %152 : vector<8x64xf32>
    %cst_60 = arith.constant 1.000000e+00 : f32
    %155 = vector.broadcast %cst_60 : f32 to vector<8x64xf32>
    %156 = arith.addf %155, %154 : vector<8x64xf32>
    %cst_61 = arith.constant 1.000000e+00 : f32
    %157 = vector.broadcast %cst_61 : f32 to vector<8x64xf32>
    %158 = arith.divf %157, %156 : vector<8x64xf32>
    %cst_62 = arith.constant 1.06140542 : f32
    %159 = vector.broadcast %cst_62 : f32 to vector<8x64xf32>
    %160 = arith.mulf %159, %158 : vector<8x64xf32>
    %cst_63 = arith.constant -1.45315206 : f32
    %161 = vector.broadcast %cst_63 : f32 to vector<8x64xf32>
    %162 = arith.addf %160, %161 : vector<8x64xf32>
    %163 = arith.mulf %162, %158 : vector<8x64xf32>
    %cst_64 = arith.constant 1.42141378 : f32
    %164 = vector.broadcast %cst_64 : f32 to vector<8x64xf32>
    %165 = arith.addf %163, %164 : vector<8x64xf32>
    %166 = arith.mulf %165, %158 : vector<8x64xf32>
    %cst_65 = arith.constant -0.284496725 : f32
    %167 = vector.broadcast %cst_65 : f32 to vector<8x64xf32>
    %168 = arith.addf %166, %167 : vector<8x64xf32>
    %169 = arith.mulf %168, %158 : vector<8x64xf32>
    %cst_66 = arith.constant 0.254829586 : f32
    %170 = vector.broadcast %cst_66 : f32 to vector<8x64xf32>
    %171 = arith.addf %169, %170 : vector<8x64xf32>
    %172 = arith.mulf %171, %158 : vector<8x64xf32>
    %cst_67 = arith.constant 0.000000e+00 : f32
    %173 = vector.broadcast %cst_67 : f32 to vector<8x64xf32>
    %174 = arith.subf %173, %152 : vector<8x64xf32>
    %175 = arith.mulf %174, %152 : vector<8x64xf32>
    %176 = math.exp %175 : vector<8x64xf32>
    %177 = arith.mulf %172, %176 : vector<8x64xf32>
    %cst_68 = arith.constant 1.000000e+00 : f32
    %178 = vector.broadcast %cst_68 : f32 to vector<8x64xf32>
    %179 = arith.subf %178, %177 : vector<8x64xf32>
    %cst_69 = arith.constant 0.000000e+00 : f32
    %180 = vector.broadcast %cst_69 : f32 to vector<8x64xf32>
    %181 = arith.cmpf oge, %151, %180 : vector<8x64xf32>
    %cst_70 = arith.constant 0.000000e+00 : f32
    %182 = vector.broadcast %cst_70 : f32 to vector<8x64xf32>
    %183 = arith.subf %182, %179 : vector<8x64xf32>
    %184 = arith.select %181, %179, %183 : vector<8x64xi1>, vector<8x64xf32>
    %cst_71 = arith.constant 1.000000e+00 : f32
    %185 = vector.broadcast %cst_71 : f32 to vector<8x64xf32>
    %186 = arith.addf %185, %184 : vector<8x64xf32>
    %187 = arith.mulf %149, %186 : vector<8x64xf32>
    %188 = arith.truncf %187 : vector<8x64xf32> to vector<8x64xbf16>
    %c0_72 = arith.constant 0 : index
    %c0_73 = arith.constant 0 : index
    %189 = vector.load %arg12[%c0_72, %c0_73] : memref<64x32xbf16, #tpu.memory_space<vmem>>, vector<64x32xbf16>
    %cst_74 = arith.constant dense<0.000000e+00> : vector<8x32xf32>
    %190 = tpu.matmul %188, %189, %cst_74 {dimension_numbers = #tpu.dot_dimension_numbers<[1], [0], [0], [1], [0, 0, 1, 1], [], []>} : vector<8x64xbf16>, vector<64x32xbf16>, vector<8x32xf32> -> vector<8x32xf32>
    %c0_75 = arith.constant 0 : index
    %c0_76 = arith.constant 0 : index
    %191 = vector.load %arg13[%c0_75, %c0_76] : memref<1x32xf32, #tpu.memory_space<vmem>>, vector<1x32xf32>
    %192 = vector.broadcast %191 : vector<1x32xf32> to vector<8x32xf32>
    %193 = arith.addf %190, %192 : vector<8x32xf32>
    %194 = arith.addf %193, %141 : vector<8x32xf32>
    %c0_77 = arith.constant 0 : index
    %c0_78 = arith.constant 0 : index
    %195 = vector.load %arg14[%c0_77, %c0_78] : memref<1x32xf32, #tpu.memory_space<vmem>>, vector<1x32xf32>
    %c0_79 = arith.constant 0 : index
    %c0_80 = arith.constant 0 : index
    %196 = vector.load %arg15[%c0_79, %c0_80] : memref<1x32xf32, #tpu.memory_space<vmem>>, vector<1x32xf32>
    %cst_81 = arith.constant dense<0.000000e+00> : vector<8xf32>
    %197 = vector.multi_reduction <add>, %194, %cst_81 [1] : vector<8x32xf32> to vector<8xf32>
    %198 = vector.shape_cast %197 : vector<8xf32> to vector<8x1xf32>
    %cst_82 = arith.constant 3.200000e+01 : f32
    %199 = vector.broadcast %cst_82 : f32 to vector<8x1xf32>
    %200 = arith.divf %198, %199 : vector<8x1xf32>
    %201 = vector.broadcast %200 : vector<8x1xf32> to vector<8x32xf32>
    %202 = arith.subf %194, %201 : vector<8x32xf32>
    %203 = arith.mulf %202, %202 : vector<8x32xf32>
    %cst_83 = arith.constant dense<0.000000e+00> : vector<8xf32>
    %204 = vector.multi_reduction <add>, %203, %cst_83 [1] : vector<8x32xf32> to vector<8xf32>
    %205 = vector.shape_cast %204 : vector<8xf32> to vector<8x1xf32>
    %cst_84 = arith.constant 3.200000e+01 : f32
    %206 = vector.broadcast %cst_84 : f32 to vector<8x1xf32>
    %207 = arith.divf %205, %206 : vector<8x1xf32>
    %208 = vector.broadcast %200 : vector<8x1xf32> to vector<8x32xf32>
    %209 = arith.subf %194, %208 : vector<8x32xf32>
    %cst_85 = arith.constant 9.99999997E-7 : f32
    %210 = vector.broadcast %cst_85 : f32 to vector<8x1xf32>
    %211 = arith.addf %207, %210 : vector<8x1xf32>
    %212 = math.rsqrt %211 : vector<8x1xf32>
    %213 = vector.broadcast %212 : vector<8x1xf32> to vector<8x32xf32>
    %214 = arith.mulf %209, %213 : vector<8x32xf32>
    %215 = vector.broadcast %195 : vector<1x32xf32> to vector<8x32xf32>
    %216 = arith.mulf %214, %215 : vector<8x32xf32>
    %217 = vector.broadcast %196 : vector<1x32xf32> to vector<8x32xf32>
    %218 = arith.addf %216, %217 : vector<8x32xf32>
    %c0_86 = arith.constant 0 : index
    %c0_87 = arith.constant 0 : index
    %c0_88 = arith.constant 0 : index
    %219 = vector.load %arg16[%c0_86, %c0_87, %c0_88] : memref<1x8x32xf32, #tpu.memory_space<vmem>>, vector<1x8x32xf32>
    %220 = vector.shape_cast %219 : vector<1x8x32xf32> to vector<8x32xf32>
    %221 = vector.shape_cast %218 : vector<8x32xf32> to vector<1x8x32xf32>
    tpu.vector_store %arg16[%c0_86, %c0_87, %c0_88], %221 {strides = array<i32>} : memref<1x8x32xf32, #tpu.memory_space<vmem>>, vector<1x8x32xf32>,
    return
  }
  func.func @transform_0(%arg0: i32) -> (i32, i32, i32) {
    %c0_i32 = arith.constant 0 : i32
    %c0_i32_0 = arith.constant 0 : i32
    %c0_i32_1 = arith.constant 0 : i32
    return %arg0, %c0_i32, %c0_i32_0 : i32, i32, i32
  }
  func.func @transform_1(%arg0: i32) -> (i32, i32, i32) {
    %c0_i32 = arith.constant 0 : i32
    %c0_i32_0 = arith.constant 0 : i32
    %c0_i32_1 = arith.constant 0 : i32
    return %arg0, %c0_i32, %c0_i32_0 : i32, i32, i32
  }
  func.func @transform_2(%arg0: i32) -> (i32, i32, i32) {
    %c0_i32 = arith.constant 0 : i32
    %c0_i32_0 = arith.constant 0 : i32
    %c0_i32_1 = arith.constant 0 : i32
    %c0_i32_2 = arith.constant 0 : i32
    return %c0_i32, %c0_i32_0, %c0_i32_1 : i32, i32, i32
  }
  func.func @transform_3(%arg0: i32) -> (i32, i32) {
    %c0_i32 = arith.constant 0 : i32
    %c0_i32_0 = arith.constant 0 : i32
    %c0_i32_1 = arith.constant 0 : i32
    return %c0_i32, %c0_i32_0 : i32, i32
  }
  func.func @transform_4(%arg0: i32) -> (i32, i32) {
    %c0_i32 = arith.constant 0 : i32
    %c0_i32_0 = arith.constant 0 : i32
    %c0_i32_1 = arith.constant 0 : i32
    return %c0_i32, %c0_i32_0 : i32, i32
  }
  func.func @transform_5(%arg0: i32) -> (i32, i32) {
    %c0_i32 = arith.constant 0 : i32
    %c0_i32_0 = arith.constant 0 : i32
    %c0_i32_1 = arith.constant 0 : i32
    return %c0_i32, %c0_i32_0 : i32, i32
  }
  func.func @transform_6(%arg0: i32) -> (i32, i32) {
    %c0_i32 = arith.constant 0 : i32
    %c0_i32_0 = arith.constant 0 : i32
    %c0_i32_1 = arith.constant 0 : i32
    return %c0_i32, %c0_i32_0 : i32, i32
  }
  func.func @transform_7(%arg0: i32) -> (i32, i32) {
    %c0_i32 = arith.constant 0 : i32
    %c0_i32_0 = arith.constant 0 : i32
    %c0_i32_1 = arith.constant 0 : i32
    return %c0_i32, %c0_i32_0 : i32, i32
  }
  func.func @transform_8(%arg0: i32) -> (i32, i32) {
    %c0_i32 = arith.constant 0 : i32
    %c0_i32_0 = arith.constant 0 : i32
    %c0_i32_1 = arith.constant 0 : i32
    return %c0_i32, %c0_i32_0 : i32, i32
  }
  func.func @transform_9(%arg0: i32) -> (i32, i32) {
    %c0_i32 = arith.constant 0 : i32
    %c0_i32_0 = arith.constant 0 : i32
    %c0_i32_1 = arith.constant 0 : i32
    return %c0_i32, %c0_i32_0 : i32, i32
  }
  func.func @transform_10(%arg0: i32) -> (i32, i32) {
    %c0_i32 = arith.constant 0 : i32
    %c0_i32_0 = arith.constant 0 : i32
    %c0_i32_1 = arith.constant 0 : i32
    return %c0_i32, %c0_i32_0 : i32, i32
  }
  func.func @transform_11(%arg0: i32) -> (i32, i32) {
    %c0_i32 = arith.constant 0 : i32
    %c0_i32_0 = arith.constant 0 : i32
    %c0_i32_1 = arith.constant 0 : i32
    return %c0_i32, %c0_i32_0 : i32, i32
  }
  func.func @transform_12(%arg0: i32) -> (i32, i32) {
    %c0_i32 = arith.constant 0 : i32
    %c0_i32_0 = arith.constant 0 : i32
    %c0_i32_1 = arith.constant 0 : i32
    return %c0_i32, %c0_i32_0 : i32, i32
  }
  func.func @transform_13(%arg0: i32) -> (i32, i32) {
    %c0_i32 = arith.constant 0 : i32
    %c0_i32_0 = arith.constant 0 : i32
    %c0_i32_1 = arith.constant 0 : i32
    return %c0_i32, %c0_i32_0 : i32, i32
  }
  func.func @transform_14(%arg0: i32) -> (i32, i32) {
    %c0_i32 = arith.constant 0 : i32
    %c0_i32_0 = arith.constant 0 : i32
    %c0_i32_1 = arith.constant 0 : i32
    return %c0_i32, %c0_i32_0 : i32, i32
  }
  func.func @transform_15(%arg0: i32) -> (i32, i32, i32) {
    %c0_i32 = arith.constant 0 : i32
    %c0_i32_0 = arith.constant 0 : i32
    %c0_i32_1 = arith.constant 0 : i32
    return %arg0, %c0_i32, %c0_i32_0 : i32, i32, i32
  }
  func.func @transform_16(%arg0: i32) -> (i32, i32, i32, i32) {
    %c0_i32 = arith.constant 0 : i32
    %c0_i32_0 = arith.constant 0 : i32
    %c0_i32_1 = arith.constant 0 : i32
    %c0_i32_2 = arith.constant 0 : i32
    return %arg0, %c0_i32, %c0_i32_0, %c0_i32_1 : i32, i32, i32, i32
  }
}

</mosaic_0001>

<bundles_post_ra>
// kernel: tpu_custom_call.1
= control target key start
LH: loop header
LB: loop body
LE: loop exit
PB: predicated region body
PF: predicated region fallthrough
CT: control target
= control target key end

     0   :  { %s2824_s0 = inlined_call_operand.vmem [shape: f32[2,8,32], index: 0, kind: input, shape index: {}]   ;;  %s2825_s1 = inlined_call_operand.hbm [shape: f32[2,8,8], index: 1, kind: input, shape index: {}]   ;;  %s2826_s2 = inlined_call_operand.vmem [shape: f32[4,8,8], index: 2, kind: input, shape index: {}]   ;;  %s2827_s3 = inlined_call_operand.hbm [shape: bf16[32,96], index: 3, kind: input, shape index: {}]   ;;  %s2828_s4 = inlined_call_operand.vmem [shape: f32[1,96], index: 4, kind: input, shape index: {}]   ;;  %s2829_s5 = inlined_call_operand.hbm [shape: bf16[32,32], index: 5, kind: input, shape index: {}]   ;;  %s2830_s6 = inlined_call_operand.vmem [shape: f32[1,32], index: 6, kind: input, shape index: {}]   ;;  %s2831_s7 = inlined_call_operand.hbm [shape: f32[1,32], index: 7, kind: input, shape index: {}]   ;;  %s2832_s8 = inlined_call_operand.hbm [shape: f32[1,32], index: 8, kind: input, shape index: {}]   ;;  %s2833_s9 = inlined_call_operand.vmem [shape: bf16[32,64], index: 9, kind: input, shape index: {}]   ;;  %s2834_s10 = inlined_call_operand.vmem [shape: f32[1,64], index: 10, kind: input, shape index: {}]   ;;  %s2835_s11 = inlined_call_operand.vmem [shape: bf16[64,32], index: 11, kind: input, shape index: {}]   ;;  %s2836_s12 = inlined_call_operand.vmem [shape: f32[1,32], index: 12, kind: input, shape index: {}]   ;;  %s2837_s13 = inlined_call_operand.vmem [shape: f32[1,32], index: 13, kind: input, shape index: {}]   ;;  %s2838_s14 = inlined_call_operand.vmem [shape: f32[1,32], index: 14, kind: input, shape index: {}]   ;;  %s2839_s15 = inlined_call_operand.hbm [shape: f32[2,8,32], index: 15, kind: output, shape index: {0}]   ;;  %s2840_s16 = inlined_call_operand.hbm [shape: f32[2,4,8,8], index: 16, kind: output, shape index: {1}]  }
   0x1   :  { %2848 = sst [smem:[#allocation19_spill]] %s2824_s0 }
   0x2   :  { %2849 = sst [smem:[#allocation20_spill]] %s2825_s1 }
   0x3   :  { %2850 = sst [smem:[#allocation21_spill]] %s2826_s2 }
   0x4   :  { %2851 = sst [smem:[#allocation22_spill]] %s2827_s3 }
   0x5   :  { %2852 = sst [smem:[#allocation23_spill]] %s2828_s4 }
   0x6   :  { %2853 = sst [smem:[#allocation24_spill]] %s2834_s10 }
   0x7   :  { %2854 = sst [smem:[#allocation25_spill]] %s2835_s11 }
   0x8   :  { %2855 = sst [smem:[#allocation26_spill]] %s2836_s12 }
   0x9   :  { %2856 = sst [smem:[#allocation27_spill]] %s2837_s13 }
   0xa   :  { %2857 = sst [smem:[#allocation28_spill]] %s2838_s14 }
   0xb   :  { %2858 = sst [smem:[#allocation29_spill]] %s2839_s15 }
   0xc   :  { %2859 = sst [smem:[#allocation30_spill]] %s2840_s16 }
   0xd   :  { %22 = vsyncpa [#allocation3], 0 }
   0xe   :  { %24 = vsyncpa [#allocation3 + $0x1], 0 }
   0xf   :  { %25 = vsyncpa [#allocation6], 0 }
  0x10   :  { %26 = vsyncpa [#allocation9], 0 }
  0x11   :  { %27 = vsyncpa [#allocation4], 0 }
  0x12   :  { %29 = vsyncpa [#allocation4 + $0x1], 0 }
  0x13   :  { %30 = vsyncpa [#allocation13], 0 }
  0x14   :  { %32 = vsyncpa [#allocation13 + $0x1], 0  ;;  %s2337_s21 = smov 0   ;;  %s2339_s22 = smov 0  }
  0x15   :  { %s2341_s23 = smov 0   ;;  %s2343_s24 = smov 0  }
  0x16 LB: > { %s2226_s25 = smov [#allocation5]   ;;  %s2358_s27 = sadd.s32 4294967295, %s2224_s24   ;;  %s2224_s24 = sphi %s2343_s24, %s2894_s24   ;;  %s2220_s23 = sphi %s2341_s23, %s2893_s23   ;;  %s2216_s22 = sphi %s2339_s22, %s2892_s22   ;;  %s2212_s21 = sphi %s2337_s21, %s2891_s21  }
  0x17   : > { %s435_s26 = sshll.u32 %s2226_s25, 4  ;;  %p1659_p0 = scmp.ge.s32.totalorder %s2224_s24, 1  ;;  %s2363_s26 = int_to_ptr.vmem [resolvable:$true] %s435_s26 }
  0x18   : > { %p2844_p1 = scmp.eq.s32.totalorder %s2358_s27, 0  ;;  %p420_p2 = scmp.lt.s32.totalorder %s2224_s24, 3 }
  0x19   : > { %s2227_s29 = smov [#allocation8]   ;;  %s2228_s17 = smov [#allocation7]  }
  0x1a   : > { %p2365_p3 = pnand %p1659_p0, %p420_p2  ;;  %s468_s30 = sshll.u32 %s2227_s29, 4  ;;  %s2378_s30 = int_to_ptr.vmem [resolvable:$true] %s468_s30 }
  0x1b   : > { %s451_s18 = sshll.u32 %s2228_s17, 4  ;;  %s2862_s3 = sld [smem:[#allocation22_spill]]  ;;  %s2380_s18 = int_to_ptr.vmem [resolvable:$true] %s451_s18 }
  0x1c   : > { %s2860_s28 = scalar_select %p2365_p3, 1, 0 }
  0x1d   : > { %p1853_p5 = pneg %p2365_p3 }
  0x1f   : > { %p2374_p6 = pnand %p1853_p5, %p2844_p1 }
  0x21   : > { %s1976_s25 = scalar_lea.hbm %s2862_s3, 256  ;;  %p2390_p8 = pneg %p2374_p6 }
  0x22   : > { %p1977_p7 = scmp.ne.s32.totalorder %s2862_s3, %s1976_s25  ;;  %p1983_p11 = scmp.lt.u32.totalorder %s1976_s25, %s2862_s3 }
  0x24   : > { %p1979_p9 = pnand %p2390_p8, %p1977_p7 }
  0x26   : > { %p1980_p10 = pneg %p1979_p9 }
  0x28   : > { %p1985_p12 = pnand %p1983_p11, %p1980_p10 }
  0x2a   : > { %1988 = shalt.err (!%p1985_p12)
}
  0x2b   : > { %s1989_s14 = scalar_lea.vmem %s2363_s26, 256  ;;  %p1997_p5 = scmp.lt.s32.totalorder %s2363_s26, %s2363_s26 }
  0x2c   : > { %p1990_p13 = scmp.ne.s32.totalorder %s2363_s26, %s1989_s14  ;;  %p1998_p4 = scmp.lt.s32.totalorder %s1989_s14, %s1989_s14 }
  0x2e   : > { %p1992_p0 = pnand %p1990_p13, %p2390_p8  ;;  %p1999_p7 = por %p1998_p4, %p1997_p5 }
  0x30   : > { %p1993_p2 = pneg %p1992_p0 }
  0x32   : > { %p2000_p9 = pnand %p1999_p7, %p1993_p2 }
  0x34   : > { %2003 = shalt.err (!%p2000_p9)
}
  0x35   : > { %s2229_s15 = smov 64   ;;  %s2230_s13 = smov 4  }
  0x36   : > { %1856 = dma.hbm_to_vmem [thread:$0]  (!%p2374_p6), %s2862_s3, 256, %s2363_s26, [#allocation6], %s2229_s15, %s2229_s15, %s2230_s13  }
  0x37   : > { %s2004_s14 = scalar_lea.hbm %s2831_s7, 16 }
  0x38   : > { %p2005_p4 = scmp.ne.s32.totalorder %s2831_s7, %s2004_s14  ;;  %p2011_p12 = scmp.lt.u32.totalorder %s2004_s14, %s2831_s7 }
  0x3a   : > { %p2007_p10 = pnand %p2005_p4, %p2390_p8 }
  0x3c   : > { %p2008_p11 = pneg %p2007_p10 }
  0x3e   : > { %p2013_p13 = pnand %p2011_p12, %p2008_p11 }
  0x40   : > { %2016 = shalt.err (!%p2013_p13)
}
  0x41   : > { %s2017_s26 = scalar_lea.vmem %s2378_s30, 16  ;;  %s2024_s12 = scalar_lea.vmem %s2378_s30, 32 }
  0x42   : > { %p2018_p0 = scmp.ne.s32.totalorder %s2378_s30, %s2017_s26  ;;  %p2025_p7 = scmp.lt.s32.totalorder %s2378_s30, %s2378_s30 }
  0x43   : > { %p2026_p9 = scmp.lt.s32.totalorder %s2024_s12, %s2017_s26 }
  0x44   : > { %p2020_p2 = pnand %p2018_p0, %p2390_p8 }
  0x45   : > { %p2027_p4 = por %p2026_p9, %p2025_p7 }
  0x46   : > { %p2021_p5 = pneg %p2020_p2 }
  0x48   : > { %p2028_p10 = pnand %p2027_p4, %p2021_p5 }
  0x4a   : > { %2031 = shalt.err (!%p2028_p10)
}
  0x4b   : > { %1862 = dma.hbm_to_vmem [thread:$0]  (!%p2374_p6), %s2831_s7, 16, %s2378_s30, [#allocation9]  }
  0x4c   : > { %s2032_s20 = scalar_lea.hbm %s2829_s5, 256 }
  0x4d   : > { %p2033_p11 = scmp.ne.s32.totalorder %s2829_s5, %s2032_s20  ;;  %p2039_p0 = scmp.lt.u32.totalorder %s2032_s20, %s2829_s5 }
  0x4f   : > { %p2035_p12 = pnand %p2033_p11, %p2390_p8 }
  0x51   : > { %p2036_p13 = pneg %p2035_p12 }
  0x53   : > { %p2041_p2 = pnand %p2039_p0, %p2036_p13 }
  0x55   : > { %2044 = shalt.err (!%p2041_p2)
}
  0x56   : > { %s2045_s30 = scalar_lea.vmem %s2380_s18, 256  ;;  %p2053_p4 = scmp.lt.s32.totalorder %s2380_s18, %s2380_s18 }
  0x57   : > { %p2046_p5 = scmp.ne.s32.totalorder %s2380_s18, %s2045_s30  ;;  %p2054_p10 = scmp.lt.s32.totalorder %s2045_s30, %s2045_s30 }
  0x59   : > { %p2048_p7 = pnand %p2046_p5, %p2390_p8  ;;  %p2055_p11 = por %p2054_p10, %p2053_p4 }
  0x5b   : > { %p2049_p9 = pneg %p2048_p7 }
  0x5d   : > { %p2056_p12 = pnand %p2055_p11, %p2049_p9 }
  0x5f   : > { %2059 = shalt.err (!%p2056_p12)
}
  0x60   : > { %1859 = dma.hbm_to_vmem [thread:$0]  (!%p2374_p6), %s2829_s5, 256, %s2380_s18, [#allocation6], %s2229_s15, %s2229_s15, %s2230_s13  }
  0x61   : > { %s2231_s11 = smov [#allocation10]   ;;  %s2060_s25 = scalar_lea.hbm %s2832_s8, 16 }
  0x62   : > { %s479_s16 = sshll.u32 %s2231_s11, 4  ;;  %p2061_p13 = scmp.ne.s32.totalorder %s2832_s8, %s2060_s25  ;;  %s480_s16 = int_to_ptr.vmem [resolvable:$true] %s479_s16 }
  0x63   : > { %p2067_p5 = scmp.lt.u32.totalorder %s2060_s25, %s2832_s8 }
  0x64   : > { %p2063_p0 = pnand %p2061_p13, %p2390_p8 }
  0x66   : > { %p2064_p2 = pneg %p2063_p0 }
  0x68   : > { %p2069_p7 = pnand %p2067_p5, %p2064_p2 }
  0x6a   : > { %2072 = shalt.err (!%p2069_p7)
}
  0x6b   : > { %s2073_s18 = scalar_lea.vmem %s480_s16, 16  ;;  %s2080_s15 = scalar_lea.vmem %s480_s16, 32 }
  0x6c   : > { %p2074_p9 = scmp.ne.s32.totalorder %s480_s16, %s2073_s18  ;;  %p2081_p11 = scmp.lt.s32.totalorder %s480_s16, %s480_s16 }
  0x6d   : > { %p2082_p12 = scmp.lt.s32.totalorder %s2080_s15, %s2073_s18 }
  0x6e   : > { %p2076_p4 = pnand %p2074_p9, %p2390_p8 }
  0x6f   : > { %p2083_p1 = por %p2082_p12, %p2081_p11 }
  0x70   : > { %p2077_p10 = pneg %p2076_p4 }
  0x72   : > { %p2084_p3 = pnand %p2083_p1, %p2077_p10 }
  0x74   : > { %2087 = shalt.err (!%p2084_p3)
}
  0x75   : > { %1865 = dma.hbm_to_vmem [thread:$0]  (!%p2374_p6), %s2832_s8, 16, %s480_s16, [#allocation9]  }
  0x76   : > { %s1658_s29 = sadd.s32 4294967294, %s2224_s24   ;;  %s2484_s0 = sadd.s32 1, %s2224_s24  }
  0x77   : > { %s68_s10 = ssub.s32 %s2224_s24, %s2484_s0  ;;  %s71_s11 = sadd.s32 1, %s2220_s23 }
  0x78   : > { %p69_p1 = scmp.eq.s32.totalorder %s68_s10, 0  ;;  %p78_p3 = scmp.ne.s32.totalorder %s2220_s23, %s2216_s22 }
  0x79   : > { %p79_p8 = scmp.eq.s32.totalorder %s2224_s24, 0  ;;  %p84_p13 = scmp.ne.s32.totalorder %s2216_s22, %s2212_s21 }
  0x7a   : > { %s2495_s19 = scalar_select %p69_p1, %s2220_s23, %s71_s11  }
  0x7b   : > { %p2497_p0 = por %p79_p8, %p78_p3  ;;  %p2865_p2 = scmp.eq.s32.totalorder %s2358_s27, 0 }
  0x7c   : > { %p381_p5 = scmp.eq.s32.totalorder %s2358_s27, 1  ;;  %p387_p7 = scmp.eq.s32.totalorder %s1658_s29, 1 }
  0x7d   : > { %p2503_p6 = por %p2865_p2, %p84_p13  ;;  %p1881_p9 = scmp.lt.s32.totalorder %s2224_s24, 2 }
  0x7e   : > { %s515_s25 = sand.u32 1, %s2220_s23   ;;  %p2510_p4 = por %p381_p5, %p78_p3 }
  0x7f   : > { %p2514_p10 = por %p387_p7, %p84_p13  ;;  %s1665_s26 = sshll.u32 %s515_s25, 3 }
  0x80   : > { %s2867_s17 = scalar_select %p2510_p4, 1, 0 }
  0x81   : > { %s2868_s14 = scalar_select %p2514_p10, 1, 0 }
  0x82   : > { %s1666_s30 = sshll.u32 %s2224_s24, 7  ;;  %s2869_s1 = sld [smem:[#allocation20_spill]] }
  0x83   : > { %s519_s12 = scalar_lea.vmem [#allocation2], %s1665_s26  ;;  %p2528_p11 = pnand %p1881_p9, %p2497_p0 }
  0x84   : > { %s526_s29 = sshll.u32 %s519_s12, 4  ;;  %s516_s11 = scalar_lea.sflag [#allocation3], %s515_s25  ;;  %s2524_s29 = int_to_ptr.vmem [resolvable:$true] %s526_s29 }
  0x85   : > { %p2090_p1 = pneg %p2528_p11 }
  0x88   : > { %s2522_s13 = scalar_lea.hbm %s2869_s1, %s1666_s30  ;;  %s2093_s18 = scalar_lea.hbm %s2869_s1, 256 }
  0x89   : > { %s2088_s3 = scalar_lea.hbm %s2522_s13, 128  ;;  %p2094_p13 = scmp.lt.u32.totalorder %s2522_s13, %s2869_s1 }
  0x8a   : > { %p2089_p12 = scmp.ne.s32.totalorder %s2522_s13, %s2088_s3  ;;  %p2095_p0 = scmp.lt.u32.totalorder %s2093_s18, %s2088_s3 }
  0x8b   : > { %p2097_p5 = scmp.lt.u32.totalorder %s2088_s3, %s2522_s13 }
  0x8c   : > { %p2091_p3 = pnand %p2090_p1, %p2089_p12  ;;  %p2096_p2 = por %p2095_p0, %p2094_p13 }
  0x8e   : > { %p2092_p8 = pneg %p2091_p3  ;;  %p2098_p7 = por %p2097_p5, %p2096_p2 }
  0x90   : > { %p2099_p9 = pnand %p2098_p7, %p2092_p8 }
  0x92   : > { %2102 = shalt.err (!%p2099_p9)
}
  0x93   : > { %s2103_s25 = scalar_lea.vmem %s2524_s29, 128  ;;  %s2232_s12 = smov [#allocation2]  }
  0x94   : > { %p2104_p12 = scmp.ne.s32.totalorder %s2524_s29, %s2103_s25  ;;  %s2108_s26 = sshll.u32 %s2232_s12, 4  ;;  %s2109_s26 = int_to_ptr.vmem [resolvable:$false] %s2108_s26 }
  0x95   : > { %s2110_s30 = scalar_lea.vmem %s2109_s26, 256  ;;  %p2111_p4 = scmp.lt.s32.totalorder %s2524_s29, %s2109_s26 }
  0x96   : > { %p2106_p3 = pnand %p2104_p12, %p2090_p1  ;;  %p2112_p13 = scmp.lt.s32.totalorder %s2110_s30, %s2103_s25 }
  0x98   : > { %p2107_p10 = pneg %p2106_p3  ;;  %p2113_p0 = por %p2112_p13, %p2111_p4 }
  0x9a   : > { %p2114_p2 = pnand %p2113_p0, %p2107_p10 }
  0x9c   : > { %2117 = shalt.err (!%p2114_p2)
}
  0x9d   : > { %1869 = dma.hbm_to_vmem [thread:$0]  (!%p2528_p11), %s2522_s13, 128, %s2524_s29, %s516_s11  }
  0x9e   : > { %p2871_p8 = scmp.ne.s32.totalorder %s2860_s28, 0 }
  0x9f   : > { %s2560_s3 = sand.u32 (!%p2871_p8), 1, %s2216_s22  }
  0xa0   : > { %535 = sbr.rel (%p2871_p8) target bundleno = 2785 (0xae1), region = 80  ;;  %s2847_s18 = sshll.u32 (!%p2871_p8), %s2560_s3, 3 }
  0xa1   : > { %s538_s20 = scalar_lea.sflag (!%p2871_p8), [#allocation3], %s2560_s3  ;;  %s2566_s15 = scalar_lea.vmem (!%p2871_p8), [#allocation2], %s2847_s18 }
  0xa7   : > { %2191 = dma.done.wait (%p2503_p6), %s538_s20, 128  }
  0xa8   : > { %2193 = vsyncadd (%p2503_p6), %s538_s20, 4294967168  ;;  %p2872_p4 = scmp.eq.s32.totalorder %s2358_s27, 0 }
  0xaa   : > { %2195 = dma.done.wait (%p2872_p4), [#allocation6], 512   ;;  %p2873_p10 = pmov %p2872_p4 }
  0xab   : > { %p2874_p11 = pmov %p2872_p4 }
  0xac   : > { %2197 = vsyncadd (%p2873_p10), [#allocation6], 4294966784 }
  0xad   : > { %2199 = dma.done.wait (%p2874_p11), [#allocation9], 32   ;;  %p2875_p1 = pmov %p2872_p4 }
  0xae   : > { %p615_p5 = scmp.lt.s32.totalorder %s2358_s27, 1  ;;  %v2233_v0 = vmov 0.0   ;;  %vm2234_vm0 = vmmov 0   ;;  %s2876_s10 = sld [smem:[#allocation19_spill]]  ;;  %v1942_v1 = vld [vmem:[#allocation5] sm:$0xff]   ;;  %v1943_v2 = vld [vmem:[#allocation5 + $0x8] sm:$0xff]  }
  0xaf   : > { %2201 = vsyncadd (%p2875_p1), [#allocation9], 4294967264  ;;  %1747 = vmatprep.subr.bf16.mxu0 %v2233_v0  ;;  %1751 = vmatprep.mubr.msk.bf16.mxu0 %vm2234_vm0, %v2233_v0  ;;  %vm645_vm1 = vcmask 261120   ;;  %s2877_s4 = sld [smem:[#allocation23_spill]]  ;;  %s2235_s26 = smov 120   ;;  %vm695_vm2 = vcmask 64512  }
  0xb0   : > { %s616_s28 = scalar_select %p615_p5, %s2358_s27, 1  ;;  %1755 = vmatprep.subr.bf16.mxu1 %v2233_v0  ;;  %1757 = vmatprep.mubr.msk.bf16.mxu1 %vm2234_vm0, %v2233_v0  ;;  %v689_v25 = vld [vmem:[%s2566_s15] sm:$0xff]  ;;  %vm760_vm3 = vcmask 1043456   ;;  %vm1160_vm4 = vcmask 130048   ;;  %vm1162_vm5 = vcmask 195584   ;;  %vm1396_vm7 = vcmask 523264  }
  0xb1   : > { %1748 = vmatpush3.bf16.msra.mxu0 %v1942_v1  ;;  %s2236_s30 = smov 96   ;;  %s2237_s20 = smov 80  }
  0xb2   : > { %s1675_s16 = sshll.u32 %s616_s28, 3  ;;  %1749 = vmatprep.subr.bf16.mxu0 %v2233_v0  ;;  %s2238_s28 = smov 88  }
  0xb3   : > { %s2240_s13 = smov 112   ;;  %s2241_s29 = smov 104  }
  0xb4   : > { %s618_s11 = scalar_lea.vmem %s2876_s10, %s1675_s16  ;;  %s2239_s16 = smov 72  }
  0xb5   : > { %v2591_v3 = vld [vmem:[%s618_s11] sm:$0xff]  ;;  %1750 = vmatpush3.bf16.msra.mxu0 %v1943_v2  ;;  %s2878_s2 = sld [smem:[#allocation21_spill]]  ;;  %s1674_s10 = sshll.u32 %s2560_s3, 5 }
  0xb6   : > { %v621_v4 = vpack.c.bf16 %v2591_v3, %v2591_v3  ;;  %1761 = vmatprep.subr.bf16.mxu0 %v2233_v0  ;;  %v1676_v5 = vld [vmem:[%s2877_s4] ss:$0 sm:$0xff]  ;;  %s2659_s11 = scalar_lea.vmem [#allocation12], %s1674_s10  ;;  %s2246_s25 = smov 8  }
  0xb7   : > { %s2247_s12 = smov 16   ;;  %s2248_s15 = smov 24  }
  0xb8   : > { %1752 = vmatmul.mubr.msk.bf16.vlgmr.msra.gmra.mrb[0].mxu0 %vm645_vm1, %v621_v4  ;;  %s2880_s10 = sld [smem:[#allocation24_spill]]  ;;  %p2883_p7 = scmp.ne.s32.totalorder %s2867_s17, 0 }
  0xb9   : > { %1763 = vmatprep.mubr.msk.bf16.mxu0 %vm2234_vm0, %v2233_v0 }
  0xbb   : > { %v691_v23 = vld [vmem:[%s2878_s2] sm:$0xff]  ;;  %v1682_v32 = vld [vmem:[%s2878_s2 + $0x8] sm:$0xff]  ;;  %v1685_v40 = vld [vmem:[%s2878_s2 + $0x10] sm:$0xff] }
  0xbc   : > { %v1688_v48 = vld [vmem:[%s2878_s2 + $0x18] sm:$0xff] }
 0x18b   : > { %v683_v6 = vpop.f32.mrb[0].mxu0 }
 0x18c   : > { %v684_v7 = vadd.f32 %v1676_v5, %v683_v6  ;;  %v1753_v8 = vpop.f32.mrb[1].mxu0 }
 0x18d   : > { %v686_v9 = vpop.f32.mrb[2].mxu0 }
 0x18e   : > { %v2603_v10 = vpack.c.bf16 %v684_v7, %v684_v7  ;;  %v1754_v11 = vpop.f32.mrb[3].mxu0 }
 0x190   : > { %806 = vrot.lane.b32.xlu1 %v2603_v10, %s2235_s26  ;;  %693 = vrot.lane.b32.xlu0 %v2603_v10, %s2236_s30  ;;  %s2881_s30 = sld [smem:[#allocation26_spill]] }
 0x194   : > { %921 = vrot.lane.b32.xlu1 %v2603_v10, %s2237_s20  ;;  %808 = vrot.lane.b32.xlu0 %v2603_v10, %s2238_s28  ;;  %s2242_s28 = smov 56   ;;  %s1716_s20 = sshll.u32 %s2358_s27, 9 }
 0x198   : > { %1034 = vrot.lane.b32.xlu1 %v2603_v10, %s2239_s16  ;;  %919 = vrot.lane.b32.xlu0 %v2603_v10, %s2240_s13  ;;  %s2243_s16 = smov 64   ;;  %s2244_s13 = smov 40  }
 0x19c   : > { %1032 = vrot.lane.b32.xlu0 %v2603_v10, %s2241_s29  ;;  %s2245_s29 = smov 48  }
 0x202   : > { %v694_v12 = vpop.permute.xlu0 %693  ;;  %v807_v15 = vpop.permute.xlu1 %806 }
 0x203   : > { %v700_v13 = vsel %vm695_vm2, %v694_v12, 0 }
 0x204   : > { %1756 = vmatpush3.bf16.xpose.msra.mxu1 %v700_v13 }
 0x205   : > { %1767 = vmatprep.subr.bf16.mxu1 %v2233_v0 }
 0x206   : > { %v809_v14 = vpop.permute.xlu0 %808  ;;  %v922_v17 = vpop.permute.xlu1 %921 }
 0x207   : > { %v814_v16 = vsel %vm695_vm2, %v809_v14, 0  ;;  %v927_v18 = vsel %vm695_vm2, %v922_v17, 0 }
 0x20a   : > { %v1035_v19 = vpop.permute.xlu1 %1034  ;;  %v920_v20 = vpop.permute.xlu0 %919 }
 0x20b   : > { %1758 = vmatmul.mubr.msk.bf16.vlgmr.msra.gmra.mrb[0].mxu1 %vm695_vm2, %v2603_v10  ;;  %v1040_v21 = vsel %vm695_vm2, %v1035_v19, 0 }
 0x20c   : > { %1768 = vmatpush3.bf16.xpose.msra.mxu1 %v814_v16  ;;  %1769 = vmatprep.mubr.msk.bf16.mxu1 %vm2234_vm0, %v2233_v0 }
 0x20d   : > { %1779 = vmatprep.subr.bf16.mxu1 %v2233_v0 }
 0x20e   : > { %v1033_v22 = vpop.permute.xlu0 %1032 }
 0x213   : > { %1770 = vmatmul.mubr.msk.bf16.vlgmr.msra.gmra.mrb[4].mxu1 %vm695_vm2, %v807_v15 }
 0x214   : > { %1780 = vmatpush3.bf16.xpose.msra.mxu1 %v927_v18  ;;  %1781 = vmatprep.mubr.msk.bf16.mxu1 %vm2234_vm0, %v2233_v0 }
 0x215   : > { %1791 = vmatprep.subr.bf16.mxu1 %v2233_v0 }
 0x21b   : > { %1782 = vmatmul.mubr.msk.bf16.vlgmr.msra.gmra.mrb[8].mxu1 %vm695_vm2, %v920_v20 }
 0x21c   : > { %1792 = vmatpush3.bf16.xpose.msra.mxu1 %v1040_v21  ;;  %1793 = vmatprep.mubr.msk.bf16.mxu1 %vm2234_vm0, %v2233_v0 }
 0x21d   : > { %1803 = vmatprep.subr.bf16.mxu1 %v2233_v0 }
 0x223   : > { %1794 = vmatmul.mubr.msk.bf16.vlgmr.msra.gmra.mrb[12].mxu1 %vm695_vm2, %v1033_v22 }
 0x224   : > { %1807 = vmatprep.mubr.msk.bf16.mxu1 %vm2234_vm0, %v2233_v0 }
 0x2de   : > { %v736_v24 = vpop.f32.mrb[0].mxu1 }
 0x2df   : > { %v737_v26 = vadd.f32 %v736_v24, %v691_v23  ;;  %v1759_v27 = vpop.f32.mrb[1].mxu1 }
 0x2e0   : > { %v739_v28 = vpop.f32.mrb[2].mxu1 }
 0x2e1   : > { %v1760_v29 = vpop.f32.mrb[3].mxu1  ;;  %v742_v30 = vadd.f32 %v737_v26, %v689_v25 }
 0x2e3   : > { %v743_v31 = vsel %vm695_vm2, %v742_v30, -inf }
 0x2e4   : > { %744 = vmax.xlane.f32.xlu1 %v743_v31 }
 0x2e6   : > { %v850_v33 = vpop.f32.mrb[4].mxu1 }
 0x2e7   : > { %v851_v34 = vadd.f32 %v1682_v32, %v850_v33  ;;  %v1771_v35 = vpop.f32.mrb[5].mxu1 }
 0x2e8   : > { %v853_v36 = vpop.f32.mrb[6].mxu1 }
 0x2e9   : > { %v1772_v37 = vpop.f32.mrb[7].mxu1  ;;  %v856_v38 = vadd.f32 %v851_v34, %v689_v25 }
 0x2eb   : > { %v857_v39 = vsel %vm695_vm2, %v856_v38, -inf }
 0x2ec   : > { %858 = vmax.xlane.f32.xlu0 %v857_v39 }
 0x2ee   : > { %v963_v41 = vpop.f32.mrb[8].mxu1 }
 0x2ef   : > { %v964_v42 = vadd.f32 %v1685_v40, %v963_v41  ;;  %v1783_v43 = vpop.f32.mrb[9].mxu1 }
 0x2f0   : > { %v966_v44 = vpop.f32.mrb[10].mxu1 }
 0x2f1   : > { %v1784_v45 = vpop.f32.mrb[11].mxu1  ;;  %v969_v46 = vadd.f32 %v964_v42, %v689_v25 }
 0x2f3   : > { %v970_v47 = vsel %vm695_vm2, %v969_v46, -inf }
 0x2f4   : > { %971 = vmax.xlane.f32.xlu0 %v970_v47  ;;  %v1945_v47 = vld [vmem:[#allocation7 + $0x8] sm:$0xff]  }
 0x2f6   : > { %v1076_v49 = vpop.f32.mrb[12].mxu1 }
 0x2f7   : > { %v1077_v50 = vadd.f32 %v1688_v48, %v1076_v49  ;;  %v1795_v51 = vpop.f32.mrb[13].mxu1 }
 0x2f8   : > { %v1079_v52 = vpop.f32.mrb[14].mxu1 }
 0x2f9   : > { %v1796_v53 = vpop.f32.mrb[15].mxu1  ;;  %v1082_v54 = vadd.f32 %v1077_v50, %v689_v25 }
 0x2fb   : > { %v1083_v55 = vsel %vm695_vm2, %v1082_v54, -inf }
 0x2fc   : > { %1084 = vmax.xlane.f32.xlu1 %v1083_v55 }
 0x371   : > { %v745_v56 = vpop.xlane.xlu1 %744 }
 0x372   : > { %v746_v57 = vsub.f32 %v742_v30, %v745_v56 }
 0x374   : > { %v747_v58 = vmul.f32 1.442695, %v746_v57 }
 0x376   : > { %1952 = vpow2.f32 %v747_v58 }
 0x379   : > { %v859_v59 = vpop.xlane.xlu0 %858 }
 0x37a   : > { %v860_v60 = vsub.f32 %v856_v38, %v859_v59 }
 0x37c   : > { %v861_v61 = vmul.f32 1.442695, %v860_v60 }
 0x37e   : > { %1954 = vpow2.f32 %v861_v61 }
 0x380   : > { %v1953_v62 = vpop.eup %1952 }
 0x381   : > { %v972_v63 = vpop.xlane.xlu0 %971  ;;  %v749_v1 = vsel %vm695_vm2, %v1953_v62, 0.0 }
 0x382   : > { %v973_v2 = vsub.f32 %v969_v46, %v972_v63  ;;  %750 = vadd.xlane.f32.xlu0 %v749_v1  ;;  %v1944_v46 = vld [vmem:[#allocation7] sm:$0xff]  }
 0x383   : > { %1804 = vmatpush3.bf16.msra.mxu1 %v1944_v46  ;;  %v1691_v63 = vld [vmem:[%s2830_s6] ss:$0 sm:$0xff] }
 0x384   : > { %v974_v4 = vmul.f32 1.442695, %v973_v2  ;;  %1805 = vmatprep.subr.bf16.mxu1 %v2233_v0 }
 0x386   : > { %1956 = vpow2.f32 %v974_v4 }
 0x387   : > { %1806 = vmatpush3.bf16.msra.mxu1 %v1945_v47 }
 0x388   : > { %v1955_v5 = vpop.eup %1954  ;;  %1819 = vmatprep.subr.bf16.mxu1 %v2233_v0 }
 0x389   : > { %v863_v6 = vsel %vm695_vm2, %v1955_v5, 0.0  ;;  %v1085_v9 = vpop.xlane.xlu1 %1084 }
 0x38a   : > { %864 = vadd.xlane.f32.xlu1 %v863_v6  ;;  %v1086_v11 = vsub.f32 %v1082_v54, %v1085_v9 }
 0x38c   : > { %v1087_v12 = vmul.f32 1.442695, %v1086_v11 }
 0x38e   : > { %1958 = vpow2.f32 %v1087_v12 }
 0x390   : > { %v1957_v7 = vpop.eup %1956 }
 0x391   : > { %v976_v8 = vsel %vm695_vm2, %v1957_v7, 0.0 }
 0x392   : > { %977 = vadd.xlane.f32.xlu0 %v976_v8 }
 0x398   : > { %v1959_v13 = vpop.eup %1958 }
 0x399   : > { %v1089_v14 = vsel %vm695_vm2, %v1959_v13, 0.0 }
 0x39b   : > { %869 = vrot.lane.b32.xlu1 %v2603_v10, %s2242_s28  ;;  %s1503_s28 = sshll.u32 %s2659_s11, 4  ;;  %s2740_s28 = int_to_ptr.vmem [resolvable:$true] %s1503_s28 }
 0x39c   : > { %s2118_s26 = scalar_lea.vmem %s2740_s28, 512 }
 0x39d   : > { %p2119_p6 = scmp.ne.s32.totalorder %s2740_s28, %s2118_s26 }
 0x39f   : > { %p2120_p9 = pnand %p2119_p6, %p2883_p7 }
 0x3a1   : > { %p2121_p12 = pneg %p2120_p9 }
 0x3a8   : > { %755 = vrot.lane.b32.xlu0 %v2603_v10, %s2243_s16 }
 0x3ac   : > { %1095 = vrot.lane.b32.xlu0 %v2603_v10, %s2244_s13 }
 0x3bf   : > { %1090 = vadd.xlane.f32.xlu1 %v1089_v14 }
 0x3d0   : > { %982 = vrot.lane.b32.xlu1 %v2603_v10, %s2245_s29  ;;  %s2882_s29 = sld [smem:[#allocation30_spill]] }
 0x40f   : > { %v751_v15 = vpop.xlane.xlu0 %750 }
 0x410   : > { %1960 = vrcp.f32 %v751_v15  ;;  %v1946_v15 = vld [vmem:[%s2833_s9] sm:$0xff]  }
 0x417   : > { %v865_v16 = vpop.xlane.xlu1 %864 }
 0x418   : > { %1962 = vrcp.f32 %v865_v16 }
 0x41a   : > { %v1961_v17 = vpop.eup %1960 }
 0x41b   : > { %v753_v18 = vmul.f32 %v1961_v17, %v1953_v62  ;;  %v870_v23 = vpop.permute.xlu1 %869 }
 0x41c   : > { %v875_v25 = vsel %vm760_vm3, %v870_v23, 0 }
 0x41d   : > { %1143 = vst.msk [vmem:[%s2659_s11] sm:$0xff] %vm695_vm2, %v753_v18  ;;  %v754_v24 = vpack.c.bf16 %v753_v18, %v753_v18 }
 0x41f   : > { %v978_v19 = vpop.xlane.xlu0 %977 }
 0x420   : > { %1964 = vrcp.f32 %v978_v19 }
 0x422   : > { %v1963_v20 = vpop.eup %1962 }
 0x423   : > { %v867_v21 = vmul.f32 %v1963_v20, %v1955_v5  ;;  %v756_v10 = vpop.permute.xlu0 %755  ;;  %v1695_v20 = vld [vmem:[#allocation8] ss:$0 sm:$0xff] }
 0x424   : > { %v762_v22 = vsel %vm760_vm3, %v756_v10, 0  ;;  %v1696_v10 = vld [vmem:[#allocation10] ss:$0 sm:$0xff] }
 0x425   : > { %1144 = vst.msk [vmem:[%s2659_s11 + $0x8] sm:$0xff] %vm695_vm2, %v867_v21  ;;  %1762 = vmatpush3.bf16.msra.mxu0 %v762_v22  ;;  %v868_v28 = vpack.c.bf16 %v867_v21, %v867_v21 }
 0x426   : > { %1773 = vmatprep.subr.bf16.mxu0 %v2233_v0 }
 0x427   : > { %v1096_v32 = vpop.permute.xlu0 %1095 }
 0x428   : > { %1764 = vmatmul.mubr.msk.bf16.vlgmr.msra.gmra.mrb[4].mxu0 %vm695_vm2, %v754_v24  ;;  %v1101_v34 = vsel %vm760_vm3, %v1096_v32, 0 }
 0x429   : > { %1774 = vmatpush3.bf16.msra.mxu0 %v875_v25  ;;  %1775 = vmatprep.mubr.msk.bf16.mxu0 %vm2234_vm0, %v2233_v0 }
 0x42a   : > { %v1965_v26 = vpop.eup %1964  ;;  %1785 = vmatprep.subr.bf16.mxu0 %v2233_v0 }
 0x42b   : > { %v980_v27 = vmul.f32 %v1965_v26, %v1957_v7 }
 0x42d   : > { %1145 = vst.msk [vmem:[%s2659_s11 + $0x10] sm:$0xff] %vm695_vm2, %v980_v27  ;;  %v981_v33 = vpack.c.bf16 %v980_v27, %v980_v27 }
 0x430   : > { %1776 = vmatmul.mubr.msk.bf16.vlgmr.msra.gmra.mrb[8].mxu0 %vm695_vm2, %v868_v28 }
 0x431   : > { %1787 = vmatprep.mubr.msk.bf16.mxu0 %vm2234_vm0, %v2233_v0 }
 0x44c   : > { %v1091_v29 = vpop.xlane.xlu1 %1090 }
 0x44d   : > { %1966 = vrcp.f32 %v1091_v29  ;;  %v1697_v29 = vld [vmem:[%s2880_s10] ss:$0 sm:$0xff]  ;;  %s2738_s10 = scalar_lea.hbm %s2882_s29, %s1716_s20 }
 0x450   : > { %v983_v30 = vpop.permute.xlu1 %982 }
 0x451   : > { %v988_v31 = vsel %vm760_vm3, %v983_v30, 0 }
 0x452   : > { %1786 = vmatpush3.bf16.msra.mxu0 %v988_v31 }
 0x453   : > { %1797 = vmatprep.subr.bf16.mxu0 %v2233_v0 }
 0x455   : > { %1788 = vmatmul.mubr.msk.bf16.vlgmr.msra.gmra.mrb[12].mxu0 %vm695_vm2, %v981_v33 }
 0x456   : > { %1798 = vmatpush3.bf16.msra.mxu0 %v1101_v34  ;;  %1799 = vmatprep.mubr.msk.bf16.mxu0 %vm2234_vm0, %v2233_v0 }
 0x457   : > { %v1967_v35 = vpop.eup %1966  ;;  %1811 = vmatprep.subr.bf16.mxu0 %v2233_v0 }
 0x458   : > { %v1093_v36 = vmul.f32 %v1967_v35, %v1959_v13 }
 0x45a   : > { %1146 = vst.msk [vmem:[%s2659_s11 + $0x18] sm:$0xff] %vm695_vm2, %v1093_v36  ;;  %v1094_v37 = vpack.c.bf16 %v1093_v36, %v1093_v36 }
 0x45d   : > { %1800 = vmatmul.mubr.msk.bf16.vlgmr.msra.gmra.mrb[16].mxu0 %vm695_vm2, %v1094_v37 }
 0x45e   : > { %1815 = vmatprep.mubr.msk.bf16.mxu0 %vm2234_vm0, %v2233_v0  ;;  %1812 = vmatpush3.bf16.msra.mxu0 %v1946_v15 }
 0x45f   : > { %1813 = vmatprep.subr.bf16.mxu0 %v2233_v0 }
 0x4fb   : > { %v798_v38 = vpop.f32.mrb[4].mxu0 }
 0x4fc   : > { %v1765_v39 = vpop.f32.mrb[5].mxu0 }
 0x4fd   : > { %v801_v40 = vpop.f32.mrb[6].mxu0 }
 0x4fe   : > { %v1766_v41 = vpop.f32.mrb[7].mxu0 }
 0x503   : > { %v911_v42 = vpop.f32.mrb[8].mxu0 }
 0x504   : > { %1148 = vrot.lane.b32.xlu1 %v911_v42, %s2246_s25  ;;  %v1777_v43 = vpop.f32.mrb[9].mxu0 }
 0x505   : > { %v914_v44 = vpop.f32.mrb[10].mxu0 }
 0x506   : > { %v1778_v45 = vpop.f32.mrb[11].mxu0 }
 0x528   : > { %v1024_v48 = vpop.f32.mrb[12].mxu0 }
 0x529   : > { %1152 = vrot.lane.b32.xlu0 %v1024_v48, %s2247_s12  ;;  %v1789_v49 = vpop.f32.mrb[13].mxu0  ;;  %s2879_s12 = sld [smem:[#allocation25_spill]] }
 0x52a   : > { %v1027_v50 = vpop.f32.mrb[14].mxu0 }
 0x52b   : > { %v1790_v51 = vpop.f32.mrb[15].mxu0 }
 0x52f   : > { %v1948_v25 = vld [vmem:[%s2879_s12] sm:$0xff]   ;;  %v1949_v26 = vld [vmem:[%s2879_s12 + $0x8] sm:$0xff]   ;;  %v1950_v27 = vld [vmem:[%s2879_s12 + $0x10] sm:$0xff]  }
 0x530   : > { %v1137_v52 = vpop.f32.mrb[16].mxu0  ;;  %v1951_v28 = vld [vmem:[%s2879_s12 + $0x18] sm:$0xff]  }
 0x531   : > { %1156 = vrot.lane.b32.xlu1 %v1137_v52, %s2248_s15  ;;  %v1801_v53 = vpop.f32.mrb[17].mxu0 }
 0x532   : > { %v1140_v54 = vpop.f32.mrb[18].mxu0 }
 0x533   : > { %v1802_v55 = vpop.f32.mrb[19].mxu0 }
 0x576   : > { %v1149_v56 = vpop.permute.xlu1 %1148 }
 0x577   : > { %v1159_v58 = vsel %vm695_vm2, %v798_v38, %v1149_v56 }
 0x59b   : > { %v1153_v57 = vpop.permute.xlu0 %1152 }
 0x59c   : > { %v1161_v59 = vsel %vm1160_vm4, %v1159_v58, %v1153_v57 }
 0x5a3   : > { %v1157_v60 = vpop.permute.xlu1 %1156 }
 0x5a4   : > { %v1163_v61 = vsel %vm1162_vm5, %v1161_v59, %v1157_v60  ;;  %v1701_v60 = vld [vmem:[%s2881_s30] ss:$0 sm:$0xff]  ;;  %s2249_s30 = smov [#allocation12]  }
 0x5a5   : > { %v1164_v62 = vpack.c.bf16 %v1163_v61, %v1163_v61  ;;  %s2122_s18 = sshll.u32 %s2249_s30, 4  ;;  %s2123_s18 = int_to_ptr.vmem [resolvable:$false] %s2122_s18 }
 0x5a6   : > { %s2124_s11 = scalar_lea.vmem %s2123_s18, 1024  ;;  %p2125_p3 = scmp.lt.s32.totalorder %s2740_s28, %s2123_s18 }
 0x5a7   : > { %1808 = vmatmul.mubr.msk.bf16.vlgmr.msra.gmra.mrb[16].mxu1 %vm645_vm1, %v1164_v62  ;;  %p2126_p13 = scmp.lt.s32.totalorder %s2124_s11, %s2118_s26 }
 0x5a8   : > { %1827 = vmatprep.mubr.msk.bf16.mxu1 %vm2234_vm0, %v2233_v0  ;;  %1820 = vmatpush3.bf16.msra.mxu1 %v1948_v25 }
 0x5a9   : > { %1821 = vmatprep.subr.bf16.mxu1 %v2233_v0  ;;  %p2127_p0 = por %p2126_p13, %p2125_p3 }
 0x5ab   : > { %p2128_p2 = pnand %p2127_p0, %p2121_p12 }
 0x5ac   : > { %1822 = vmatpush3.bf16.msra.mxu1 %v1949_v26 }
 0x5ad   : > { %1823 = vmatprep.subr.bf16.mxu1 %v2233_v0 }
 0x5b0   : > { %1824 = vmatpush3.bf16.msra.mxu1 %v1950_v27 }
 0x5b1   : > { %1825 = vmatprep.subr.bf16.mxu1 %v2233_v0 }
 0x5b4   : > { %1826 = vmatpush3.bf16.msra.mxu1 %v1951_v28 }
 0x67a   : > { %v1225_v1 = vpop.f32.mrb[16].mxu1 }
 0x67b   : > { %v1226_v2 = vadd.f32 %v1691_v63, %v1225_v1  ;;  %v1809_v4 = vpop.f32.mrb[17].mxu1 }
 0x67c   : > { %v1228_v5 = vpop.f32.mrb[18].mxu1 }
 0x67d   : > { %v1810_v6 = vpop.f32.mrb[19].mxu1  ;;  %v1231_v7 = vadd.f32 %v1226_v2, %v2591_v3  ;;  %v1947_v3 = vld [vmem:[%s2833_s9 + $0x8] sm:$0xff]  }
 0x67e   : > { %1814 = vmatpush3.bf16.msra.mxu0 %v1947_v3 }
 0x67f   : > { %v1234_v8 = vsel %vm645_vm1, %v1231_v7, 0.0 }
 0x680   : > { %1235 = vadd.xlane.f32.xlu0 %v1234_v8 }
 0x70d   : > { %v1236_v9 = vpop.xlane.xlu0 %1235 }
 0x70e   : > { %v1238_v11 = vmul.f32 0.03125, %v1236_v9 }
 0x710   : > { %v1239_v12 = vsub.f32 %v1231_v7, %v1238_v11 }
 0x712   : > { %v1240_v13 = vmul.f32 %v1239_v12, %v1239_v12 }
 0x714   : > { %v1241_v14 = vsel %vm645_vm1, %v1240_v13, 0.0 }
 0x715   : > { %1242 = vadd.xlane.f32.xlu1 %v1241_v14 }
 0x7a2   : > { %v1243_v16 = vpop.xlane.xlu1 %1242 }
 0x7a3   : > { %v1244_v17 = vmul.f32 0.03125, %v1243_v16 }
 0x7a5   : > { %v1245_v18 = vadd.f32 1e-06, %v1244_v17 }
 0x7a7   : > { %1968 = vrsqrt.f32 %v1245_v18 }
 0x7b1   : > { %v1969_v19 = vpop.eup %1968 }
 0x7b2   : > { %v1247_v21 = vmul.f32 %v1969_v19, %v1239_v12 }
 0x7b4   : > { %v1254_v22 = vmul.f32 %v1695_v20, %v1247_v21 }
 0x7b6   : > { %v1261_v23 = vadd.f32 %v1696_v10, %v1254_v22 }
 0x7b8   : > { %v1262_v24 = vpack.c.bf16 %v1261_v23, %v1261_v23 }
 0x7ba   : > { %1816 = vmatmul.mubr.msk.bf16.vlgmr.msra.gmra.mrb[20].mxu0 %vm645_vm1, %v1262_v24 }
 0x88d   : > { %v1323_v30 = vpop.f32.mrb[20].mxu0 }
 0x88e   : > { %v1324_v31 = vadd.f32 %v1697_v29, %v1323_v30  ;;  %v1817_v32 = vpop.f32.mrb[21].mxu0 }
 0x88f   : > { %v1326_v33 = vpop.f32.mrb[22].mxu0 }
 0x890   : > { %v1330_v34 = vmul.f32 0.70710677, %v1324_v31  ;;  %v1818_v35 = vpop.f32.mrb[23].mxu0  ;;  %v1329_v56 = vmul.f32 0.5, %v1324_v31 }
 0x892   : > { %v1331_v36 = vand.u32 2147483647, %v1330_v34  ;;  %vm1351_vm6 = vcmp.ge.f32.partialorder %v1330_v34, 0.0 }
 0x894   : > { %v1332_v37 = vmul.f32 0.3275911, %v1331_v36  ;;  %v1345_v0 = vsub.f32 0.0, %v1331_v36 }
 0x896   : > { %v1333_v38 = vadd.f32 1.0, %v1332_v37  ;;  %v1346_v40 = vmul.f32 %v1345_v0, %v1331_v36 }
 0x898   : > { %1970 = vrcp.f32 %v1333_v38  ;;  %v1347_v43 = vmul.f32 1.442695, %v1346_v40 }
 0x89a   : > { %1972 = vpow2.f32 %v1347_v43 }
 0x8a2   : > { %v1971_v39 = vpop.eup %1970 }
 0x8a3   : > { %v1336_v41 = vmul.f32 1.0614054, %v1971_v39 }
 0x8a4   : > { %v1973_v51 = vpop.eup %1972 }
 0x8a5   : > { %v1337_v42 = vadd.f32 -1.4531521, %v1336_v41 }
 0x8a7   : > { %v1338_v44 = vmul.f32 %v1971_v39, %v1337_v42 }
 0x8a9   : > { %v1339_v45 = vadd.f32 1.4214138, %v1338_v44 }
 0x8ab   : > { %v1340_v46 = vmul.f32 %v1971_v39, %v1339_v45 }
 0x8ad   : > { %v1341_v47 = vadd.f32 -0.28449672, %v1340_v46 }
 0x8af   : > { %v1342_v48 = vmul.f32 %v1971_v39, %v1341_v47 }
 0x8b1   : > { %v1343_v49 = vadd.f32 0.2548296, %v1342_v48 }
 0x8b3   : > { %v1344_v50 = vmul.f32 %v1971_v39, %v1343_v49 }
 0x8b5   : > { %v1349_v52 = vmul.f32 %v1973_v51, %v1344_v50 }
 0x8b7   : > { %v1350_v53 = vsub.f32 1.0, %v1349_v52 }
 0x8b9   : > { %v1352_v54 = vsub.f32 0.0, %v1350_v53 }
 0x8bb   : > { %v1353_v55 = vsel %vm1351_vm6, %v1350_v53, %v1352_v54 }
 0x8bc   : > { %v1354_v57 = vadd.f32 1.0, %v1353_v55 }
 0x8be   : > { %v1355_v58 = vmul.f32 %v1354_v57, %v1329_v56 }
 0x8c0   : > { %v1356_v59 = vpack.c.bf16 %v1355_v58, %v1355_v58 }
 0x8c2   : > { %1828 = vmatmul.mubr.msk.bf16.vlgmr.msra.gmra.mrb[20].mxu1 %vm1396_vm7, %v1356_v59 }
 0x995   : > { %v1434_v61 = vpop.f32.mrb[20].mxu1 }
 0x996   : > { %v1435_v62 = vadd.f32 %v1701_v60, %v1434_v61  ;;  %v1829_v63 = vpop.f32.mrb[21].mxu1 }
 0x997   : > { %v1437_v1 = vpop.f32.mrb[22].mxu1 }
 0x998   : > { %v1830_v2 = vpop.f32.mrb[23].mxu1  ;;  %v1440_v4 = vadd.f32 %v1435_v62, %v1261_v23 }
 0x99a   : > { %v1443_v5 = vsel %vm645_vm1, %v1440_v4, 0.0 }
 0x99b   : > { %1444 = vadd.xlane.f32.xlu0 %v1443_v5 }
 0xa28   : > { %v1445_v6 = vpop.xlane.xlu0 %1444 }
 0xa29   : > { %v1446_v7 = vmul.f32 0.03125, %v1445_v6 }
 0xa2b   : > { %v1447_v8 = vsub.f32 %v1440_v4, %v1446_v7 }
 0xa2d   : > { %v1448_v9 = vmul.f32 %v1447_v8, %v1447_v8 }
 0xa2f   : > { %v1449_v11 = vsel %vm645_vm1, %v1448_v9, 0.0 }
 0xa30   : > { %1450 = vadd.xlane.f32.xlu0 %v1449_v11 }
 0xa31   : > { %2131 = shalt.err (!%p2128_p2)
}
 0xa32   : > { %s2132_s20 = scalar_lea.hbm %s2738_s10, 512  ;;  %s2136_s30 = scalar_lea.hbm %s2882_s29, 1024 }
 0xa33   : > { %p2133_p8 = scmp.ne.s32.totalorder %s2738_s10, %s2132_s20  ;;  %p2137_p11 = scmp.lt.u32.totalorder %s2738_s10, %s2882_s29 }
 0xa34   : > { %p2138_p1 = scmp.lt.u32.totalorder %s2136_s30, %s2132_s20  ;;  %p2140_p6 = scmp.lt.u32.totalorder %s2132_s20, %s2738_s10 }
 0xa35   : > { %p2134_p4 = pnand %p2133_p8, %p2883_p7 }
 0xa36   : > { %p2139_p5 = por %p2138_p1, %p2137_p11 }
 0xa37   : > { %p2135_p10 = pneg %p2134_p4 }
 0xa38   : > { %p2141_p9 = por %p2140_p6, %p2139_p5 }
 0xa3a   : > { %p2142_p12 = pnand %p2141_p9, %p2135_p10 }
 0xa3c   : > { %2145 = shalt.err (!%p2142_p12)
}
 0xa3d   : > { %s2250_s26 = smov 128   ;;  %s2884_s11 = scalar_lea.sflag [#allocation13], %s2560_s3 }
 0xa3e   : > { %1850 = dma.vmem_to_hbm [thread:$0]  (%p2883_p7), %s2740_s28, 512, %s2738_s10, %s2884_s11, %s2250_s26, %s2250_s26, %s2246_s25  }
 0xa3f   : > { %s2885_s16 = sld [smem:[#allocation27_spill]]  ;;  %s2886_s18 = sld [smem:[#allocation28_spill]] }
 0xa40   : > { %s1711_s1 = sshll.u32 %s2358_s27, 7  ;;  %s2887_s2 = sshll.u32 %s2560_s3, 3 }
 0xa41   : > { %s607_s4 = scalar_lea.vmem [#allocation11], %s2887_s2  ;;  %s2888_s26 = sld [smem:[#allocation29_spill]] }
 0xa42   : > { %s1490_s25 = sshll.u32 %s607_s4, 4  ;;  %s1472_s15 = scalar_lea.sflag [#allocation4], %s2560_s3  ;;  %s2781_s25 = int_to_ptr.vmem [resolvable:$true] %s1490_s25 }
 0xa43   : > { %s2146_s20 = scalar_lea.vmem %s2781_s25, 128  ;;  %s2251_s2 = smov [#allocation11]  }
 0xa44   : > { %p2147_p3 = scmp.ne.s32.totalorder %s2781_s25, %s2146_s20  ;;  %s2150_s27 = sshll.u32 %s2251_s2, 4  ;;  %s2151_s27 = int_to_ptr.vmem [resolvable:$false] %s2150_s27 }
 0xa45   : > { %v1707_v3 = vld [vmem:[%s2885_s16] ss:$0 sm:$0xff]  ;;  %s2152_s16 = scalar_lea.vmem %s2151_s27, 256  ;;  %p2153_p2 = scmp.lt.s32.totalorder %s2781_s25, %s2151_s27 }
 0xa46   : > { %v1708_v17 = vld [vmem:[%s2886_s18] ss:$0 sm:$0xff]  ;;  %p2148_p13 = pnand %p2147_p3, %p2883_p7  ;;  %p2154_p8 = scmp.lt.s32.totalorder %s2152_s16, %s2146_s20 }
 0xa47   : > { %s2779_s11 = scalar_lea.hbm %s2888_s26, %s1711_s1 }
 0xa48   : > { %p2149_p0 = pneg %p2148_p13  ;;  %p2155_p4 = por %p2154_p8, %p2153_p2 }
 0xa4a   : > { %p2156_p10 = pnand %p2155_p4, %p2149_p0 }
 0xabd   : > { %v1451_v12 = vpop.xlane.xlu0 %1450 }
 0xabe   : > { %v1452_v13 = vmul.f32 0.03125, %v1451_v12 }
 0xac0   : > { %v1453_v14 = vadd.f32 1e-06, %v1452_v13 }
 0xac2   : > { %1974 = vrsqrt.f32 %v1453_v14 }
 0xacc   : > { %v1975_v15 = vpop.eup %1974 }
 0xacd   : > { %v1455_v16 = vmul.f32 %v1975_v15, %v1447_v8 }
 0xacf   : > { %v1462_v18 = vmul.f32 %v1707_v3, %v1455_v16 }
 0xad1   : > { %v1469_v19 = vadd.f32 %v1708_v17, %v1462_v18 }
 0xad3   : > { %1470 = vst.msk [vmem:[%s607_s4] sm:$0xff] %vm645_vm1, %v1469_v19 }
 0xad4   : > { %2159 = shalt.err (!%p2156_p10)
}
 0xad5   : > { %s2160_s1 = scalar_lea.hbm %s2779_s11, 128  ;;  %s2164_s13 = scalar_lea.hbm %s2888_s26, 256 }
 0xad6   : > { %p2161_p11 = scmp.ne.s32.totalorder %s2779_s11, %s2160_s1  ;;  %p2165_p6 = scmp.lt.u32.totalorder %s2779_s11, %s2888_s26 }
 0xad7   : > { %p2166_p9 = scmp.lt.u32.totalorder %s2164_s13, %s2160_s1  ;;  %p2168_p3 = scmp.lt.u32.totalorder %s2160_s1, %s2779_s11 }
 0xad8   : > { %p2162_p1 = pnand %p2161_p11, %p2883_p7 }
 0xad9   : > { %p2167_p12 = por %p2166_p9, %p2165_p6 }
 0xada   : > { %p2163_p5 = pneg %p2162_p1 }
 0xadb   : > { %p2169_p13 = por %p2168_p3, %p2167_p12 }
 0xadd   : > { %p2170_p0 = pnand %p2169_p13, %p2163_p5 }
 0xadf   : > { %2173 = shalt.err (!%p2170_p0)
}
 0xae0   : > { %1849 = dma.vmem_to_hbm [thread:$0]  (%p2883_p7), %s2781_s25, 128, %s2779_s11, %s1472_s15  }
 0xae1 PF: > { %s1518_s28 = sand.u32 1, %s2212_s21   ;;  %p2889_p2 = scmp.ne.s32.totalorder %s2868_s14, 0 }
 0xae2   : > { %p2890_p8 = scmp.ge.s32.totalorder %s2224_s24, 2  ;;  %s1519_s10 = scalar_lea.sflag [#allocation4], %s1518_s28 }
 0xae4   : > { %p1871_p4 = pnand %p2890_p8, %p2889_p2 }
 0xae6   : > { %2203 = dma.done.wait (!%p1871_p4), %s1519_s10, 128  }
 0xae7   : > { %2205 = vsyncadd (!%p1871_p4), %s1519_s10, 4294967168  ;;  %s1528_s20 = scalar_lea.sflag [#allocation13], %s1518_s28 }
 0xae8   : > { %2207 = dma.done.wait (!%p1871_p4), %s1528_s20, 512  }
 0xae9   : > { %2209 = vsyncadd (!%p1871_p4), %s1528_s20, 4294966784  ;;  %p35_p7 = scmp.ge.s32.totalorder %s2484_s0, 4   ;;  %s2891_s21 = smov %s2216_s22 }
 0xaea   : > { %s2892_s22 = smov %s2220_s23  ;;  %s2893_s23 = smov %s2495_s19 }
 0xaeb   : > { %s2894_s24 = smov %s2484_s0  ;;  %37 = sbr.rel (!%p35_p7) target bundleno = 22 (0x16), region = 164 }
 0xaf2   :  { %1533 = vsyncpa [#allocation3], 1 }
 0xaf3   :  { %1535 = vsyncpa [#allocation3 + $0x1], 1 }
 0xaf4   :  { %1536 = vsyncpa [#allocation6], 1 }
 0xaf5   :  { %1537 = vsyncpa [#allocation9], 1 }
 0xaf6   :  { %1538 = vsyncpa [#allocation4], 1 }
 0xaf7   :  { %1540 = vsyncpa [#allocation4 + $0x1], 1 }
 0xaf8   :  { %1541 = vsyncpa [#allocation13], 1 }
 0xaf9   :  { %1543 = vsyncpa [#allocation13 + $0x1], 1 }

</bundles_post_ra>
